<compile_context>
chip_gen: v7x
topology: tpu7x:2x2x1
jax: 0.10.0
libtpu: 0.0.40
codegen_flags: <defaults>
</compile_context>

<pallas_src>
import math

import jax
import jax.numpy as jnp
from jax.experimental import pallas as pl
from jax.experimental.pallas import tpu as pltpu

# ----- small, module-consistent hyper-parameters -----
B = 2            # batch
S = 8            # sequence length
HIDDEN = 32      # hidden_size
INTER = 64       # intermediate_size
N_HEADS = 4      # num_attention_heads
HEAD_DIM = HIDDEN // N_HEADS
N_LAYERS = 2     # num_bert_layers
VOCAB = 100      # vocab_size
TYPE_VOCAB = 2   # type_vocab_size
MAX_SEQ = 16     # max_sequence_len
NUM_LABELS = 3
EPS = 1e-12
INIT_RANGE = 0.02

SLAB_W = 128                     # lane width of the weight / bias slabs
QKV_W = 3 * HIDDEN               # 96 meaningful lanes of the fused QKV weight
VOCAB_PAD = 104                  # vocab rows padded to a multiple of 8
OUT_ROWS = 8                     # logits rows padded to a full sublane tile

# ---- weight-slab row offsets ----
W_PER_LAYER = 3 * HIDDEN + INTER            # 160 rows/layer: qkv | wo | w1 | w2
W_QKV, W_WO, W_W1, W_W2 = 0, HIDDEN, 2 * HIDDEN, 3 * HIDDEN
W_POOL = N_LAYERS * W_PER_LAYER             # pooler weight rows
W_CLS = W_POOL + HIDDEN                     # classifier weight rows

# ---- bias-slab row offsets (8 rows per layer, then one 8-row global block) ----
B_PER_LAYER = 8
(R_BQKV, R_BO, R_B1, R_B2, R_LN1G, R_LN1B, R_LN2G, R_LN2B) = range(8)
B_GLOBAL = N_LAYERS * B_PER_LAYER
(R_EMBG, R_EMBB, R_POOLB, R_CLSB) = range(4)


# ---------------------------------------------------------------------------
# In-kernel helpers
# ---------------------------------------------------------------------------
def _layernorm(x, g, b, eps=EPS):
    mu = jnp.mean(x, axis=-1, keepdims=True)
    xc = x - mu
    var = jnp.mean(xc * xc, axis=-1, keepdims=True)
    return xc * jax.lax.rsqrt(var + eps) * g + b


def _gelu(y):
    # TODO(synk): tanh-approximate GELU; PyTorch BertIntermediate default is exact erf GELU (~1e-3 diff).
    return 0.5 * y * (1.0 + jnp.tanh(0.7978845608028654 * (y + 0.044715 * y * y * y)))


# ---------------------------------------------------------------------------
# Single fused Pallas kernel:
#   in-kernel embedding gather -> emb LayerNorm -> N BERT layers -> pooler -> head
# ---------------------------------------------------------------------------
def _bert_kernel(ids_ref, mask_ref, emb_ref, w_ref, b_ref, out_ref, emb_scratch):
    bsz, seq = mask_ref.shape
    scale = 1.0 / math.sqrt(HEAD_DIM)

    glob = b_ref[B_GLOBAL:B_GLOBAL + 8, :]                    # (8,128) aligned load
    emb_g = glob[R_EMBG:R_EMBG + 1, 0:HIDDEN]
    emb_b = glob[R_EMBB:R_EMBB + 1, 0:HIDDEN]
    pool_b = glob[R_POOLB:R_POOLB + 1, 0:HIDDEN]
    cls_b = glob[R_CLSB:R_CLSB + 1, :]

    # ---- fused embedding lookup (token ids from SMEM scalar prefetch) ----
    for b in range(bsz):                                       # static unroll (16 rows)
        for s in range(seq):
            tok = ids_ref[b, s]
            emb_scratch[pl.ds(b * seq + s, 1), :] = emb_ref[pl.ds(tok, 1), :]
    pos = emb_ref[VOCAB_PAD:VOCAB_PAD + seq, :]                # pos_emb + type_emb[0]
    x = emb_scratch[...].reshape(bsz, seq, HIDDEN) + pos[None, :, :]
    x = _layernorm(x.reshape(bsz * seq, HIDDEN), emb_g, emb_b)

    # additive attention-mask bias, (B, 1, S); 1 = keep, 0 = pad
    bias3 = ((1.0 - mask_ref[...]) * -10000.0)[:, None, :]

    for l in range(N_LAYERS):                                  # static unroll
        wb = l * W_PER_LAYER
        bias_blk = b_ref[l * B_PER_LAYER:(l + 1) * B_PER_LAYER, :]   # (8,128)

        # ---- self-attention: fused QKV matmul (lane-dense, 128 wide) ----
        qkv = jnp.dot(x, w_ref[wb + W_QKV:wb + W_QKV + HIDDEN, :],
                      preferred_element_type=jnp.float32)
        qkv = qkv + bias_blk[R_BQKV:R_BQKV + 1, :]
        q3 = qkv[:, 0:HIDDEN].reshape(bsz, seq, HIDDEN)
        k3 = qkv[:, HIDDEN:2 * HIDDEN].reshape(bsz, seq, HIDDEN)
        v3 = qkv[:, 2 * HIDDEN:3 * HIDDEN].reshape(bsz, seq, HIDDEN)

        ctx_parts = []
        for h in range(N_HEADS):                               # static unroll (4 heads)
            lo, hi = h * HEAD_DIM, (h + 1) * HEAD_DIM
            sc = jnp.einsum("bqd,bkd->bqk", q3[:, :, lo:hi], k3[:, :, lo:hi],
                            preferred_element_type=jnp.float32) * scale
            sc = sc + bias3
            e = jnp.exp(sc - jnp.max(sc, axis=-1, keepdims=True))
            p = e * pl.reciprocal(jnp.sum(e, axis=-1, keepdims=True), approx=True)
            ctx_parts.append(jnp.einsum("bqk,bkd->bqd", p, v3[:, :, lo:hi],
                                        preferred_element_type=jnp.float32))
        # merge heads once, then a single output projection (no per-head accumulation)
        ctx = jnp.concatenate(ctx_parts, axis=-1).reshape(bsz * seq, HIDDEN)
        attn = jnp.dot(ctx, w_ref[wb + W_WO:wb + W_WO + HIDDEN, 0:HIDDEN],
                       preferred_element_type=jnp.float32)
        attn = attn + bias_blk[R_BO:R_BO + 1, 0:HIDDEN]
        x = _layernorm(attn + x, bias_blk[R_LN1G:R_LN1G + 1, 0:HIDDEN],
                       bias_blk[R_LN1B:R_LN1B + 1, 0:HIDDEN])

        # ---- feed forward ----
        hdn = jnp.dot(x, w_ref[wb + W_W1:wb + W_W1 + HIDDEN, 0:INTER],
                      preferred_element_type=jnp.float32)
        hdn = _gelu(hdn + bias_blk[R_B1:R_B1 + 1, 0:INTER])
        ffn = jnp.dot(hdn, w_ref[wb + W_W2:wb + W_W2 + INTER, 0:HIDDEN],
                      preferred_element_type=jnp.float32)
        ffn = ffn + bias_blk[R_B2:R_B2 + 1, 0:HIDDEN]
        x = _layernorm(ffn + x, bias_blk[R_LN2G:R_LN2G + 1, 0:HIDDEN],
                       bias_blk[R_LN2B:R_LN2B + 1, 0:HIDDEN])

    # ---- pooler: tanh(W * hidden[:, 0] + b) ----
    cls_tok = x.reshape(bsz, seq, HIDDEN)[:, 0, :]                        # (B, H)
    pooled = jnp.tanh(
        jnp.dot(cls_tok, w_ref[W_POOL:W_POOL + HIDDEN, 0:HIDDEN],
                preferred_element_type=jnp.float32) + pool_b)

    # ---- classifier head: 128-lane padded, rows padded to a full (8,128) store ----
    logits = jnp.dot(pooled, w_ref[W_CLS:W_CLS + HIDDEN, :],
                     preferred_element_type=jnp.float32) + cls_b          # (B, 128)
    out_ref[...] = jnp.concatenate(
        [logits, jnp.zeros((OUT_ROWS - bsz, SLAB_W), jnp.float32)], axis=0)


# ---------------------------------------------------------------------------
# Parameter init: deterministic synthetic weights, pre-packed into 3 slabs
# ---------------------------------------------------------------------------
def init_params(key):
    def nrm(k, shape):
        return (INIT_RANGE * jax.random.normal(k, shape)).astype(jnp.float32)

    def pad_w(m):                      # pad a weight matrix to 128 lanes
        return jnp.pad(m, ((0, 0), (0, SLAB_W - m.shape[1])))

    def brow(v):                       # one 128-lane bias/LN row
        v = jnp.asarray(v, jnp.float32).reshape(1, -1)
        return jnp.pad(v, ((0, 0), (0, SLAB_W - v.shape[1])))

    keys = iter(jax.random.split(key, 3 + 6 * N_LAYERS + 2))

    # embedding slab: [word rows padded to 104 | (pos_emb[:S] + type_emb[0]) rows]
    word = nrm(next(keys), (VOCAB, HIDDEN))
    pos = nrm(next(keys), (MAX_SEQ, HIDDEN))
    typ = nrm(next(keys), (TYPE_VOCAB, HIDDEN))
    emb_slab = jnp.concatenate(
        [jnp.pad(word, ((0, VOCAB_PAD - VOCAB), (0, 0))),
         pos[:S] + typ[0][None, :]], axis=0)                   # (112, 32)

    w_rows, b_rows = [], []
    for _ in range(N_LAYERS):
        wq, wk, wv = (nrm(next(keys), (HIDDEN, HIDDEN)) for _ in range(3))
        w_rows += [pad_w(jnp.concatenate([wq, wk, wv], axis=1)),     # fused QKV (32,128)
                   pad_w(nrm(next(keys), (HIDDEN, HIDDEN))),         # wo
                   pad_w(nrm(next(keys), (HIDDEN, INTER))),          # w1
                   pad_w(nrm(next(keys), (INTER, HIDDEN)))]          # w2
        b_rows += [brow(jnp.zeros(QKV_W)),      # bqkv
                   brow(jnp.zeros(HIDDEN)),     # bo
                   brow(jnp.zeros(INTER)),      # b1
                   brow(jnp.zeros(HIDDEN)),     # b2
                   brow(jnp.ones(HIDDEN)),      # ln1_g
                   brow(jnp.zeros(HIDDEN)),     # ln1_b
                   brow(jnp.ones(HIDDEN)),      # ln2_g
                   brow(jnp.zeros(HIDDEN))]     # ln2_b
    w_rows += [pad_w(nrm(next(keys), (HIDDEN, HIDDEN))),             # pooler W
               pad_w(nrm(next(keys), (HIDDEN, NUM_LABELS)))]         # classifier W
    b_rows += [brow(jnp.ones(HIDDEN)),          # emb_ln_g
               brow(jnp.zeros(HIDDEN)),         # emb_ln_b
               brow(jnp.zeros(HIDDEN)),         # pool_b
               brow(jnp.zeros(SLAB_W)),         # cls_b
               jnp.zeros((4, SLAB_W), jnp.float32)]   # pad global block to 8 rows

    return {"emb_slab": emb_slab,
            "w_slab": jnp.concatenate(w_rows, axis=0),    # (384, 128)
            "b_slab": jnp.concatenate(b_rows, axis=0)}    # (24, 128)


# ---------------------------------------------------------------------------
# Forward pass: one fused Pallas kernel, ids via SMEM scalar prefetch
# ---------------------------------------------------------------------------
@jax.jit
def bert_sentiment_forward(params, input_ids, attention_mask):
    bsz, seq = input_ids.shape
    mask = attention_mask.astype(jnp.float32)

    def full(a):
        return pl.BlockSpec(a.shape, lambda i, ids: (0,) * a.ndim)

    out = pl.pallas_call(
        _bert_kernel,
        out_shape=jax.ShapeDtypeStruct((OUT_ROWS, SLAB_W), jnp.float32),
        grid_spec=pltpu.PrefetchScalarGridSpec(
            num_scalar_prefetch=1,                      # input_ids -> SMEM
            grid=(1,),
            in_specs=[full(mask), full(params["emb_slab"]),
                      full(params["w_slab"]), full(params["b_slab"])],
            out_specs=pl.BlockSpec((OUT_ROWS, SLAB_W), lambda i, ids: (0, 0)),
            scratch_shapes=[pltpu.VMEM((bsz * seq, HIDDEN), jnp.float32)],
        ),
        compiler_params=pltpu.CompilerParams(
            dimension_semantics=("arbitrary",)),
        # TODO(synk): on v7x a grid=(B,) parallel batch axis would use the 2nd
        # TensorCore; kept grid=(1,) so v5e/v6e pay no extra per-step overhead.
    )(input_ids.astype(jnp.int32), mask, params["emb_slab"],
      params["w_slab"], params["b_slab"])
    return out[:bsz, :NUM_LABELS]


if __name__ == "__main__":
    key = jax.random.PRNGKey(0)
    pkey, ikey = jax.random.split(key)
    params = init_params(pkey)

    input_ids = jax.random.randint(ikey, (B, S), 1, VOCAB, dtype=jnp.int32)
    # pad-mask: second sequence has its last 3 tokens padded out
    attention_mask = jnp.array(
        [[1, 1, 1, 1, 1, 1, 1, 1],
         [1, 1, 1, 1, 1, 0, 0, 0]], dtype=jnp.float32)
    input_ids = input_ids * attention_mask.astype(jnp.int32)   # pad_token_id = 0

    logits = bert_sentiment_forward(params, input_ids, attention_mask)
    logits = jax.block_until_ready(logits)
    assert logits.shape == (B, NUM_LABELS)
    assert bool(jnp.all(jnp.isfinite(logits)))
    print("KERNEL_OK")
</pallas_src>

<mosaic_0001>
module attributes {stable_mosaic.version = 11 : i64} {
  func.func @_bert_kernel(%arg0: i32, %arg1: memref<2x8xi32, #tpu.memory_space<smem>>, %arg2: memref<2x8xf32, #tpu.memory_space<vmem>>, %arg3: memref<112x32xf32, #tpu.memory_space<vmem>>, %arg4: memref<384x128xf32, #tpu.memory_space<vmem>>, %arg5: memref<24x128xf32, #tpu.memory_space<vmem>>, %arg6: memref<8x128xf32, #tpu.memory_space<vmem>>, %arg7: memref<16x32xf32, #tpu.memory_space<vmem>>) attributes {dimension_semantics = [#tpu.dimension_semantics<arbitrary>], iteration_bounds = array<i64: 1>, scalar_prefetch = 1 : i64, scratch_operands = 1 : i64, tpu.core_type = #tpu.core_type<tc>, window_params = [{pipeline_mode = #tpu.pipeline_mode<synchronous>, transform_indices = @transform_0, window_bounds = array<i64: 2, 8>}, {pipeline_mode = #tpu.pipeline_mode<synchronous>, transform_indices = @transform_1, window_bounds = array<i64: 112, 32>}, {pipeline_mode = #tpu.pipeline_mode<synchronous>, transform_indices = @transform_2, window_bounds = array<i64: 384, 128>}, {pipeline_mode = #tpu.pipeline_mode<synchronous>, transform_indices = @transform_3, window_bounds = array<i64: 24, 128>}, {pipeline_mode = #tpu.pipeline_mode<synchronous>, transform_indices = @transform_4, window_bounds = array<i64: 8, 128>}]} {
    %c16 = arith.constant 16 : index
    %c0 = arith.constant 0 : index
    %0 = vector.load %arg5[%c16, %c0] : memref<24x128xf32, #tpu.memory_space<vmem>>, vector<8x128xf32>
    %1 = vector.extract_strided_slice %0 {offsets = [0, 0], sizes = [1, 32], strides = [1, 1]} : vector<8x128xf32> to vector<1x32xf32>
    %2 = vector.extract_strided_slice %0 {offsets = [1, 0], sizes = [1, 32], strides = [1, 1]} : vector<8x128xf32> to vector<1x32xf32>
    %3 = vector.extract_strided_slice %0 {offsets = [2, 0], sizes = [1, 32], strides = [1, 1]} : vector<8x128xf32> to vector<1x32xf32>
    %4 = vector.extract_strided_slice %0 {offsets = [3, 0], sizes = [1, 128], strides = [1, 1]} : vector<8x128xf32> to vector<1x128xf32>
    %c0_0 = arith.constant 0 : index
    %c0_1 = arith.constant 0 : index
    %5 = memref.load %arg1[%c0_0, %c0_1] : memref<2x8xi32, #tpu.memory_space<smem>>
    %6 = arith.index_cast %5 : i32 to index
    %c0_2 = arith.constant 0 : index
    %7 = vector.load %arg3[%6, %c0_2] : memref<112x32xf32, #tpu.memory_space<vmem>>, vector<1x32xf32>
    %c0_3 = arith.constant 0 : index
    %c0_4 = arith.constant 0 : index
    %8 = vector.load %arg7[%c0_3, %c0_4] : memref<16x32xf32, #tpu.memory_space<vmem>>, vector<1x32xf32>
    tpu.vector_store %arg7[%c0_3, %c0_4], %7 {strides = array<i32>} : memref<16x32xf32, #tpu.memory_space<vmem>>, vector<1x32xf32>,
    %c0_5 = arith.constant 0 : index
    %c1 = arith.constant 1 : index
    %9 = memref.load %arg1[%c0_5, %c1] : memref<2x8xi32, #tpu.memory_space<smem>>
    %10 = arith.index_cast %9 : i32 to index
    %c0_6 = arith.constant 0 : index
    %11 = vector.load %arg3[%10, %c0_6] : memref<112x32xf32, #tpu.memory_space<vmem>>, vector<1x32xf32>
    %c1_7 = arith.constant 1 : index
    %c0_8 = arith.constant 0 : index
    %12 = vector.load %arg7[%c1_7, %c0_8] : memref<16x32xf32, #tpu.memory_space<vmem>>, vector<1x32xf32>
    tpu.vector_store %arg7[%c1_7, %c0_8], %11 {strides = array<i32>} : memref<16x32xf32, #tpu.memory_space<vmem>>, vector<1x32xf32>,
    %c0_9 = arith.constant 0 : index
    %c2 = arith.constant 2 : index
    %13 = memref.load %arg1[%c0_9, %c2] : memref<2x8xi32, #tpu.memory_space<smem>>
    %14 = arith.index_cast %13 : i32 to index
    %c0_10 = arith.constant 0 : index
    %15 = vector.load %arg3[%14, %c0_10] : memref<112x32xf32, #tpu.memory_space<vmem>>, vector<1x32xf32>
    %c2_11 = arith.constant 2 : index
    %c0_12 = arith.constant 0 : index
    %16 = vector.load %arg7[%c2_11, %c0_12] : memref<16x32xf32, #tpu.memory_space<vmem>>, vector<1x32xf32>
    tpu.vector_store %arg7[%c2_11, %c0_12], %15 {strides = array<i32>} : memref<16x32xf32, #tpu.memory_space<vmem>>, vector<1x32xf32>,
    %c0_13 = arith.constant 0 : index
    %c3 = arith.constant 3 : index
    %17 = memref.load %arg1[%c0_13, %c3] : memref<2x8xi32, #tpu.memory_space<smem>>
    %18 = arith.index_cast %17 : i32 to index
    %c0_14 = arith.constant 0 : index
    %19 = vector.load %arg3[%18, %c0_14] : memref<112x32xf32, #tpu.memory_space<vmem>>, vector<1x32xf32>
    %c3_15 = arith.constant 3 : index
    %c0_16 = arith.constant 0 : index
    %20 = vector.load %arg7[%c3_15, %c0_16] : memref<16x32xf32, #tpu.memory_space<vmem>>, vector<1x32xf32>
    tpu.vector_store %arg7[%c3_15, %c0_16], %19 {strides = array<i32>} : memref<16x32xf32, #tpu.memory_space<vmem>>, vector<1x32xf32>,
    %c0_17 = arith.constant 0 : index
    %c4 = arith.constant 4 : index
    %21 = memref.load %arg1[%c0_17, %c4] : memref<2x8xi32, #tpu.memory_space<smem>>
    %22 = arith.index_cast %21 : i32 to index
    %c0_18 = arith.constant 0 : index
    %23 = vector.load %arg3[%22, %c0_18] : memref<112x32xf32, #tpu.memory_space<vmem>>, vector<1x32xf32>
    %c4_19 = arith.constant 4 : index
    %c0_20 = arith.constant 0 : index
    %24 = vector.load %arg7[%c4_19, %c0_20] : memref<16x32xf32, #tpu.memory_space<vmem>>, vector<1x32xf32>
    tpu.vector_store %arg7[%c4_19, %c0_20], %23 {strides = array<i32>} : memref<16x32xf32, #tpu.memory_space<vmem>>, vector<1x32xf32>,
    %c0_21 = arith.constant 0 : index
    %c5 = arith.constant 5 : index
    %25 = memref.load %arg1[%c0_21, %c5] : memref<2x8xi32, #tpu.memory_space<smem>>
    %26 = arith.index_cast %25 : i32 to index
    %c0_22 = arith.constant 0 : index
    %27 = vector.load %arg3[%26, %c0_22] : memref<112x32xf32, #tpu.memory_space<vmem>>, vector<1x32xf32>
    %c5_23 = arith.constant 5 : index
    %c0_24 = arith.constant 0 : index
    %28 = vector.load %arg7[%c5_23, %c0_24] : memref<16x32xf32, #tpu.memory_space<vmem>>, vector<1x32xf32>
    tpu.vector_store %arg7[%c5_23, %c0_24], %27 {strides = array<i32>} : memref<16x32xf32, #tpu.memory_space<vmem>>, vector<1x32xf32>,
    %c0_25 = arith.constant 0 : index
    %c6 = arith.constant 6 : index
    %29 = memref.load %arg1[%c0_25, %c6] : memref<2x8xi32, #tpu.memory_space<smem>>
    %30 = arith.index_cast %29 : i32 to index
    %c0_26 = arith.constant 0 : index
    %31 = vector.load %arg3[%30, %c0_26] : memref<112x32xf32, #tpu.memory_space<vmem>>, vector<1x32xf32>
    %c6_27 = arith.constant 6 : index
    %c0_28 = arith.constant 0 : index
    %32 = vector.load %arg7[%c6_27, %c0_28] : memref<16x32xf32, #tpu.memory_space<vmem>>, vector<1x32xf32>
    tpu.vector_store %arg7[%c6_27, %c0_28], %31 {strides = array<i32>} : memref<16x32xf32, #tpu.memory_space<vmem>>, vector<1x32xf32>,
    %c0_29 = arith.constant 0 : index
    %c7 = arith.constant 7 : index
    %33 = memref.load %arg1[%c0_29, %c7] : memref<2x8xi32, #tpu.memory_space<smem>>
    %34 = arith.index_cast %33 : i32 to index
    %c0_30 = arith.constant 0 : index
    %35 = vector.load %arg3[%34, %c0_30] : memref<112x32xf32, #tpu.memory_space<vmem>>, vector<1x32xf32>
    %c7_31 = arith.constant 7 : index
    %c0_32 = arith.constant 0 : index
    %36 = vector.load %arg7[%c7_31, %c0_32] : memref<16x32xf32, #tpu.memory_space<vmem>>, vector<1x32xf32>
    tpu.vector_store %arg7[%c7_31, %c0_32], %35 {strides = array<i32>} : memref<16x32xf32, #tpu.memory_space<vmem>>, vector<1x32xf32>,
    %c1_33 = arith.constant 1 : index
    %c0_34 = arith.constant 0 : index
    %37 = memref.load %arg1[%c1_33, %c0_34] : memref<2x8xi32, #tpu.memory_space<smem>>
    %38 = arith.index_cast %37 : i32 to index
    %c0_35 = arith.constant 0 : index
    %39 = vector.load %arg3[%38, %c0_35] : memref<112x32xf32, #tpu.memory_space<vmem>>, vector<1x32xf32>
    %c8 = arith.constant 8 : index
    %c0_36 = arith.constant 0 : index
    %40 = vector.load %arg7[%c8, %c0_36] : memref<16x32xf32, #tpu.memory_space<vmem>>, vector<1x32xf32>
    tpu.vector_store %arg7[%c8, %c0_36], %39 {strides = array<i32>} : memref<16x32xf32, #tpu.memory_space<vmem>>, vector<1x32xf32>,
    %c1_37 = arith.constant 1 : index
    %c1_38 = arith.constant 1 : index
    %41 = memref.load %arg1[%c1_37, %c1_38] : memref<2x8xi32, #tpu.memory_space<smem>>
    %42 = arith.index_cast %41 : i32 to index
    %c0_39 = arith.constant 0 : index
    %43 = vector.load %arg3[%42, %c0_39] : memref<112x32xf32, #tpu.memory_space<vmem>>, vector<1x32xf32>
    %c9 = arith.constant 9 : index
    %c0_40 = arith.constant 0 : index
    %44 = vector.load %arg7[%c9, %c0_40] : memref<16x32xf32, #tpu.memory_space<vmem>>, vector<1x32xf32>
    tpu.vector_store %arg7[%c9, %c0_40], %43 {strides = array<i32>} : memref<16x32xf32, #tpu.memory_space<vmem>>, vector<1x32xf32>,
    %c1_41 = arith.constant 1 : index
    %c2_42 = arith.constant 2 : index
    %45 = memref.load %arg1[%c1_41, %c2_42] : memref<2x8xi32, #tpu.memory_space<smem>>
    %46 = arith.index_cast %45 : i32 to index
    %c0_43 = arith.constant 0 : index
    %47 = vector.load %arg3[%46, %c0_43] : memref<112x32xf32, #tpu.memory_space<vmem>>, vector<1x32xf32>
    %c10 = arith.constant 10 : index
    %c0_44 = arith.constant 0 : index
    %48 = vector.load %arg7[%c10, %c0_44] : memref<16x32xf32, #tpu.memory_space<vmem>>, vector<1x32xf32>
    tpu.vector_store %arg7[%c10, %c0_44], %47 {strides = array<i32>} : memref<16x32xf32, #tpu.memory_space<vmem>>, vector<1x32xf32>,
    %c1_45 = arith.constant 1 : index
    %c3_46 = arith.constant 3 : index
    %49 = memref.load %arg1[%c1_45, %c3_46] : memref<2x8xi32, #tpu.memory_space<smem>>
    %50 = arith.index_cast %49 : i32 to index
    %c0_47 = arith.constant 0 : index
    %51 = vector.load %arg3[%50, %c0_47] : memref<112x32xf32, #tpu.memory_space<vmem>>, vector<1x32xf32>
    %c11 = arith.constant 11 : index
    %c0_48 = arith.constant 0 : index
    %52 = vector.load %arg7[%c11, %c0_48] : memref<16x32xf32, #tpu.memory_space<vmem>>, vector<1x32xf32>
    tpu.vector_store %arg7[%c11, %c0_48], %51 {strides = array<i32>} : memref<16x32xf32, #tpu.memory_space<vmem>>, vector<1x32xf32>,
    %c1_49 = arith.constant 1 : index
    %c4_50 = arith.constant 4 : index
    %53 = memref.load %arg1[%c1_49, %c4_50] : memref<2x8xi32, #tpu.memory_space<smem>>
    %54 = arith.index_cast %53 : i32 to index
    %c0_51 = arith.constant 0 : index
    %55 = vector.load %arg3[%54, %c0_51] : memref<112x32xf32, #tpu.memory_space<vmem>>, vector<1x32xf32>
    %c12 = arith.constant 12 : index
    %c0_52 = arith.constant 0 : index
    %56 = vector.load %arg7[%c12, %c0_52] : memref<16x32xf32, #tpu.memory_space<vmem>>, vector<1x32xf32>
    tpu.vector_store %arg7[%c12, %c0_52], %55 {strides = array<i32>} : memref<16x32xf32, #tpu.memory_space<vmem>>, vector<1x32xf32>,
    %c1_53 = arith.constant 1 : index
    %c5_54 = arith.constant 5 : index
    %57 = memref.load %arg1[%c1_53, %c5_54] : memref<2x8xi32, #tpu.memory_space<smem>>
    %58 = arith.index_cast %57 : i32 to index
    %c0_55 = arith.constant 0 : index
    %59 = vector.load %arg3[%58, %c0_55] : memref<112x32xf32, #tpu.memory_space<vmem>>, vector<1x32xf32>
    %c13 = arith.constant 13 : index
    %c0_56 = arith.constant 0 : index
    %60 = vector.load %arg7[%c13, %c0_56] : memref<16x32xf32, #tpu.memory_space<vmem>>, vector<1x32xf32>
    tpu.vector_store %arg7[%c13, %c0_56], %59 {strides = array<i32>} : memref<16x32xf32, #tpu.memory_space<vmem>>, vector<1x32xf32>,
    %c1_57 = arith.constant 1 : index
    %c6_58 = arith.constant 6 : index
    %61 = memref.load %arg1[%c1_57, %c6_58] : memref<2x8xi32, #tpu.memory_space<smem>>
    %62 = arith.index_cast %61 : i32 to index
    %c0_59 = arith.constant 0 : index
    %63 = vector.load %arg3[%62, %c0_59] : memref<112x32xf32, #tpu.memory_space<vmem>>, vector<1x32xf32>
    %c14 = arith.constant 14 : index
    %c0_60 = arith.constant 0 : index
    %64 = vector.load %arg7[%c14, %c0_60] : memref<16x32xf32, #tpu.memory_space<vmem>>, vector<1x32xf32>
    tpu.vector_store %arg7[%c14, %c0_60], %63 {strides = array<i32>} : memref<16x32xf32, #tpu.memory_space<vmem>>, vector<1x32xf32>,
    %c1_61 = arith.constant 1 : index
    %c7_62 = arith.constant 7 : index
    %65 = memref.load %arg1[%c1_61, %c7_62] : memref<2x8xi32, #tpu.memory_space<smem>>
    %66 = arith.index_cast %65 : i32 to index
    %c0_63 = arith.constant 0 : index
    %67 = vector.load %arg3[%66, %c0_63] : memref<112x32xf32, #tpu.memory_space<vmem>>, vector<1x32xf32>
    %c15 = arith.constant 15 : index
    %c0_64 = arith.constant 0 : index
    %68 = vector.load %arg7[%c15, %c0_64] : memref<16x32xf32, #tpu.memory_space<vmem>>, vector<1x32xf32>
    tpu.vector_store %arg7[%c15, %c0_64], %67 {strides = array<i32>} : memref<16x32xf32, #tpu.memory_space<vmem>>, vector<1x32xf32>,
    %c104 = arith.constant 104 : index
    %c0_65 = arith.constant 0 : index
    %69 = vector.load %arg3[%c104, %c0_65] : memref<112x32xf32, #tpu.memory_space<vmem>>, vector<8x32xf32>
    %c0_66 = arith.constant 0 : index
    %c0_67 = arith.constant 0 : index
    %70 = vector.load %arg7[%c0_66, %c0_67] : memref<16x32xf32, #tpu.memory_space<vmem>>, vector<16x32xf32>
    %71 = vector.shape_cast %70 : vector<16x32xf32> to vector<2x8x32xf32>
    %72 = vector.shape_cast %69 : vector<8x32xf32> to vector<1x8x32xf32>
    %73 = vector.broadcast %72 : vector<1x8x32xf32> to vector<2x8x32xf32>
    %74 = arith.addf %71, %73 : vector<2x8x32xf32>
    %75 = vector.shape_cast %74 : vector<2x8x32xf32> to vector<16x32xf32>
    %cst = arith.constant dense<0.000000e+00> : vector<16xf32>
    %76 = vector.multi_reduction <add>, %75, %cst [1] : vector<16x32xf32> to vector<16xf32>
    %77 = vector.shape_cast %76 : vector<16xf32> to vector<16x1xf32>
    %cst_68 = arith.constant 3.200000e+01 : f32
    %78 = vector.broadcast %cst_68 : f32 to vector<16x1xf32>
    %79 = arith.divf %77, %78 : vector<16x1xf32>
    %80 = vector.broadcast %79 : vector<16x1xf32> to vector<16x32xf32>
    %81 = arith.subf %75, %80 : vector<16x32xf32>
    %82 = arith.mulf %81, %81 : vector<16x32xf32>
    %cst_69 = arith.constant dense<0.000000e+00> : vector<16xf32>
    %83 = vector.multi_reduction <add>, %82, %cst_69 [1] : vector<16x32xf32> to vector<16xf32>
    %84 = vector.shape_cast %83 : vector<16xf32> to vector<16x1xf32>
    %cst_70 = arith.constant 3.200000e+01 : f32
    %85 = vector.broadcast %cst_70 : f32 to vector<16x1xf32>
    %86 = arith.divf %84, %85 : vector<16x1xf32>
    %cst_71 = arith.constant 9.99999996E-13 : f32
    %87 = vector.broadcast %cst_71 : f32 to vector<16x1xf32>
    %88 = arith.addf %86, %87 : vector<16x1xf32>
    %89 = math.rsqrt %88 : vector<16x1xf32>
    %90 = vector.broadcast %89 : vector<16x1xf32> to vector<16x32xf32>
    %91 = arith.mulf %81, %90 : vector<16x32xf32>
    %92 = vector.broadcast %1 : vector<1x32xf32> to vector<16x32xf32>
    %93 = arith.mulf %91, %92 : vector<16x32xf32>
    %94 = vector.broadcast %2 : vector<1x32xf32> to vector<16x32xf32>
    %95 = arith.addf %93, %94 : vector<16x32xf32>
    %c0_72 = arith.constant 0 : index
    %c0_73 = arith.constant 0 : index
    %96 = vector.load %arg2[%c0_72, %c0_73] : memref<2x8xf32, #tpu.memory_space<vmem>>, vector<2x8xf32>
    %cst_74 = arith.constant 1.000000e+00 : f32
    %97 = vector.broadcast %cst_74 : f32 to vector<2x8xf32>
    %98 = arith.subf %97, %96 : vector<2x8xf32>
    %cst_75 = arith.constant -1.000000e+04 : f32
    %99 = vector.broadcast %cst_75 : f32 to vector<2x8xf32>
    %100 = arith.mulf %98, %99 : vector<2x8xf32>
    %101 = vector.shape_cast %100 : vector<2x8xf32> to vector<2x1x8xf32>
    %c0_76 = arith.constant 0 : index
    %c0_77 = arith.constant 0 : index
    %102 = vector.load %arg5[%c0_76, %c0_77] : memref<24x128xf32, #tpu.memory_space<vmem>>, vector<8x128xf32>
    %c0_78 = arith.constant 0 : index
    %c0_79 = arith.constant 0 : index
    %103 = vector.load %arg4[%c0_78, %c0_79] : memref<384x128xf32, #tpu.memory_space<vmem>>, vector<32x128xf32>
    %cst_80 = arith.constant dense<0.000000e+00> : vector<16x128xf32>
    %104 = tpu.matmul %95, %103, %cst_80 {dimension_numbers = #tpu.dot_dimension_numbers<[1], [0], [0], [1], [0, 0, 1, 1], [], []>} : vector<16x32xf32>, vector<32x128xf32>, vector<16x128xf32> -> vector<16x128xf32>
    %105 = vector.extract_strided_slice %102 {offsets = [0, 0], sizes = [1, 128], strides = [1, 1]} : vector<8x128xf32> to vector<1x128xf32>
    %106 = vector.broadcast %105 : vector<1x128xf32> to vector<16x128xf32>
    %107 = arith.addf %104, %106 : vector<16x128xf32>
    %108 = vector.extract_strided_slice %107 {offsets = [0, 0], sizes = [16, 32], strides = [1, 1]} : vector<16x128xf32> to vector<16x32xf32>
    %109 = vector.shape_cast %108 : vector<16x32xf32> to vector<2x8x32xf32>
    %110 = vector.extract_strided_slice %107 {offsets = [0, 32], sizes = [16, 32], strides = [1, 1]} : vector<16x128xf32> to vector<16x32xf32>
    %111 = vector.shape_cast %110 : vector<16x32xf32> to vector<2x8x32xf32>
    %112 = vector.extract_strided_slice %107 {offsets = [0, 64], sizes = [16, 32], strides = [1, 1]} : vector<16x128xf32> to vector<16x32xf32>
    %113 = vector.shape_cast %112 : vector<16x32xf32> to vector<2x8x32xf32>
    %114 = vector.extract_strided_slice %109 {offsets = [0, 0, 0], sizes = [2, 8, 8], strides = [1, 1, 1]} : vector<2x8x32xf32> to vector<2x8x8xf32>
    %115 = vector.extract_strided_slice %111 {offsets = [0, 0, 0], sizes = [2, 8, 8], strides = [1, 1, 1]} : vector<2x8x32xf32> to vector<2x8x8xf32>
    "tpu.trace_start"() <{level = 10 : i32, message = "bqd,bkd->bqk"}> : () -> ()
    %cst_81 = arith.constant dense<0.000000e+00> : vector<2x8x8xf32>
    %116 = tpu.matmul %114, %115, %cst_81 {dimension_numbers = #tpu.dot_dimension_numbers<[2], [2], [1], [1], [0, 0, 0, 1, 1, 1], [0], [0]>} : vector<2x8x8xf32>, vector<2x8x8xf32>, vector<2x8x8xf32> -> vector<2x8x8xf32>
    "tpu.trace_stop"() : () -> ()
    %cst_82 = arith.constant 0.353553385 : f32
    %117 = vector.broadcast %cst_82 : f32 to vector<2x8x8xf32>
    %118 = arith.mulf %116, %117 : vector<2x8x8xf32>
    %119 = vector.broadcast %101 : vector<2x1x8xf32> to vector<2x8x8xf32>
    %120 = arith.addf %118, %119 : vector<2x8x8xf32>
    %cst_83 = arith.constant dense<0xFF800000> : vector<2x8xf32>
    %121 = vector.multi_reduction <maximumf>, %120, %cst_83 [2] : vector<2x8x8xf32> to vector<2x8xf32>
    %122 = vector.shape_cast %121 : vector<2x8xf32> to vector<2x8x1xf32>
    %123 = vector.broadcast %122 : vector<2x8x1xf32> to vector<2x8x8xf32>
    %124 = arith.subf %120, %123 : vector<2x8x8xf32>
    %125 = math.exp %124 : vector<2x8x8xf32>
    %cst_84 = arith.constant dense<0.000000e+00> : vector<2x8xf32>
    %126 = vector.multi_reduction <add>, %125, %cst_84 [2] : vector<2x8x8xf32> to vector<2x8xf32>
    %127 = vector.shape_cast %126 : vector<2x8xf32> to vector<2x8x1xf32>
    %128 = tpu.reciprocal %127 {approx = true} : vector<2x8x1xf32> -> vector<2x8x1xf32>
    %129 = vector.broadcast %128 : vector<2x8x1xf32> to vector<2x8x8xf32>
    %130 = arith.mulf %125, %129 : vector<2x8x8xf32>
    %131 = vector.extract_strided_slice %113 {offsets = [0, 0, 0], sizes = [2, 8, 8], strides = [1, 1, 1]} : vector<2x8x32xf32> to vector<2x8x8xf32>
    "tpu.trace_start"() <{level = 10 : i32, message = "bqk,bkd->bqd"}> : () -> ()
    %cst_85 = arith.constant dense<0.000000e+00> : vector<2x8x8xf32>
    %132 = tpu.matmul %130, %131, %cst_85 {dimension_numbers = #tpu.dot_dimension_numbers<[2], [1], [1], [2], [0, 0, 0, 1, 1, 2], [0], [0]>} : vector<2x8x8xf32>, vector<2x8x8xf32>, vector<2x8x8xf32> -> vector<2x8x8xf32>
    "tpu.trace_stop"() : () -> ()
    %133 = vector.extract_strided_slice %109 {offsets = [0, 0, 8], sizes = [2, 8, 8], strides = [1, 1, 1]} : vector<2x8x32xf32> to vector<2x8x8xf32>
    %134 = vector.extract_strided_slice %111 {offsets = [0, 0, 8], sizes = [2, 8, 8], strides = [1, 1, 1]} : vector<2x8x32xf32> to vector<2x8x8xf32>
    "tpu.trace_start"() <{level = 10 : i32, message = "bqd,bkd->bqk"}> : () -> ()
    %cst_86 = arith.constant dense<0.000000e+00> : vector<2x8x8xf32>
    %135 = tpu.matmul %133, %134, %cst_86 {dimension_numbers = #tpu.dot_dimension_numbers<[2], [2], [1], [1], [0, 0, 0, 1, 1, 1], [0], [0]>} : vector<2x8x8xf32>, vector<2x8x8xf32>, vector<2x8x8xf32> -> vector<2x8x8xf32>
    "tpu.trace_stop"() : () -> ()
    %cst_87 = arith.constant 0.353553385 : f32
    %136 = vector.broadcast %cst_87 : f32 to vector<2x8x8xf32>
    %137 = arith.mulf %135, %136 : vector<2x8x8xf32>
    %138 = vector.broadcast %101 : vector<2x1x8xf32> to vector<2x8x8xf32>
    %139 = arith.addf %137, %138 : vector<2x8x8xf32>
    %cst_88 = arith.constant dense<0xFF800000> : vector<2x8xf32>
    %140 = vector.multi_reduction <maximumf>, %139, %cst_88 [2] : vector<2x8x8xf32> to vector<2x8xf32>
    %141 = vector.shape_cast %140 : vector<2x8xf32> to vector<2x8x1xf32>
    %142 = vector.broadcast %141 : vector<2x8x1xf32> to vector<2x8x8xf32>
    %143 = arith.subf %139, %142 : vector<2x8x8xf32>
    %144 = math.exp %143 : vector<2x8x8xf32>
    %cst_89 = arith.constant dense<0.000000e+00> : vector<2x8xf32>
    %145 = vector.multi_reduction <add>, %144, %cst_89 [2] : vector<2x8x8xf32> to vector<2x8xf32>
    %146 = vector.shape_cast %145 : vector<2x8xf32> to vector<2x8x1xf32>
    %147 = tpu.reciprocal %146 {approx = true} : vector<2x8x1xf32> -> vector<2x8x1xf32>
    %148 = vector.broadcast %147 : vector<2x8x1xf32> to vector<2x8x8xf32>
    %149 = arith.mulf %144, %148 : vector<2x8x8xf32>
    %150 = vector.extract_strided_slice %113 {offsets = [0, 0, 8], sizes = [2, 8, 8], strides = [1, 1, 1]} : vector<2x8x32xf32> to vector<2x8x8xf32>
    "tpu.trace_start"() <{level = 10 : i32, message = "bqk,bkd->bqd"}> : () -> ()
    %cst_90 = arith.constant dense<0.000000e+00> : vector<2x8x8xf32>
    %151 = tpu.matmul %149, %150, %cst_90 {dimension_numbers = #tpu.dot_dimension_numbers<[2], [1], [1], [2], [0, 0, 0, 1, 1, 2], [0], [0]>} : vector<2x8x8xf32>, vector<2x8x8xf32>, vector<2x8x8xf32> -> vector<2x8x8xf32>
    "tpu.trace_stop"() : () -> ()
    %152 = vector.extract_strided_slice %109 {offsets = [0, 0, 16], sizes = [2, 8, 8], strides = [1, 1, 1]} : vector<2x8x32xf32> to vector<2x8x8xf32>
    %153 = vector.extract_strided_slice %111 {offsets = [0, 0, 16], sizes = [2, 8, 8], strides = [1, 1, 1]} : vector<2x8x32xf32> to vector<2x8x8xf32>
    "tpu.trace_start"() <{level = 10 : i32, message = "bqd,bkd->bqk"}> : () -> ()
    %cst_91 = arith.constant dense<0.000000e+00> : vector<2x8x8xf32>
    %154 = tpu.matmul %152, %153, %cst_91 {dimension_numbers = #tpu.dot_dimension_numbers<[2], [2], [1], [1], [0, 0, 0, 1, 1, 1], [0], [0]>} : vector<2x8x8xf32>, vector<2x8x8xf32>, vector<2x8x8xf32> -> vector<2x8x8xf32>
    "tpu.trace_stop"() : () -> ()
    %cst_92 = arith.constant 0.353553385 : f32
    %155 = vector.broadcast %cst_92 : f32 to vector<2x8x8xf32>
    %156 = arith.mulf %154, %155 : vector<2x8x8xf32>
    %157 = vector.broadcast %101 : vector<2x1x8xf32> to vector<2x8x8xf32>
    %158 = arith.addf %156, %157 : vector<2x8x8xf32>
    %cst_93 = arith.constant dense<0xFF800000> : vector<2x8xf32>
    %159 = vector.multi_reduction <maximumf>, %158, %cst_93 [2] : vector<2x8x8xf32> to vector<2x8xf32>
    %160 = vector.shape_cast %159 : vector<2x8xf32> to vector<2x8x1xf32>
    %161 = vector.broadcast %160 : vector<2x8x1xf32> to vector<2x8x8xf32>
    %162 = arith.subf %158, %161 : vector<2x8x8xf32>
    %163 = math.exp %162 : vector<2x8x8xf32>
    %cst_94 = arith.constant dense<0.000000e+00> : vector<2x8xf32>
    %164 = vector.multi_reduction <add>, %163, %cst_94 [2] : vector<2x8x8xf32> to vector<2x8xf32>
    %165 = vector.shape_cast %164 : vector<2x8xf32> to vector<2x8x1xf32>
    %166 = tpu.reciprocal %165 {approx = true} : vector<2x8x1xf32> -> vector<2x8x1xf32>
    %167 = vector.broadcast %166 : vector<2x8x1xf32> to vector<2x8x8xf32>
    %168 = arith.mulf %163, %167 : vector<2x8x8xf32>
    %169 = vector.extract_strided_slice %113 {offsets = [0, 0, 16], sizes = [2, 8, 8], strides = [1, 1, 1]} : vector<2x8x32xf32> to vector<2x8x8xf32>
    "tpu.trace_start"() <{level = 10 : i32, message = "bqk,bkd->bqd"}> : () -> ()
    %cst_95 = arith.constant dense<0.000000e+00> : vector<2x8x8xf32>
    %170 = tpu.matmul %168, %169, %cst_95 {dimension_numbers = #tpu.dot_dimension_numbers<[2], [1], [1], [2], [0, 0, 0, 1, 1, 2], [0], [0]>} : vector<2x8x8xf32>, vector<2x8x8xf32>, vector<2x8x8xf32> -> vector<2x8x8xf32>
    "tpu.trace_stop"() : () -> ()
    %171 = vector.extract_strided_slice %109 {offsets = [0, 0, 24], sizes = [2, 8, 8], strides = [1, 1, 1]} : vector<2x8x32xf32> to vector<2x8x8xf32>
    %172 = vector.extract_strided_slice %111 {offsets = [0, 0, 24], sizes = [2, 8, 8], strides = [1, 1, 1]} : vector<2x8x32xf32> to vector<2x8x8xf32>
    "tpu.trace_start"() <{level = 10 : i32, message = "bqd,bkd->bqk"}> : () -> ()
    %cst_96 = arith.constant dense<0.000000e+00> : vector<2x8x8xf32>
    %173 = tpu.matmul %171, %172, %cst_96 {dimension_numbers = #tpu.dot_dimension_numbers<[2], [2], [1], [1], [0, 0, 0, 1, 1, 1], [0], [0]>} : vector<2x8x8xf32>, vector<2x8x8xf32>, vector<2x8x8xf32> -> vector<2x8x8xf32>
    "tpu.trace_stop"() : () -> ()
    %cst_97 = arith.constant 0.353553385 : f32
    %174 = vector.broadcast %cst_97 : f32 to vector<2x8x8xf32>
    %175 = arith.mulf %173, %174 : vector<2x8x8xf32>
    %176 = vector.broadcast %101 : vector<2x1x8xf32> to vector<2x8x8xf32>
    %177 = arith.addf %175, %176 : vector<2x8x8xf32>
    %cst_98 = arith.constant dense<0xFF800000> : vector<2x8xf32>
    %178 = vector.multi_reduction <maximumf>, %177, %cst_98 [2] : vector<2x8x8xf32> to vector<2x8xf32>
    %179 = vector.shape_cast %178 : vector<2x8xf32> to vector<2x8x1xf32>
    %180 = vector.broadcast %179 : vector<2x8x1xf32> to vector<2x8x8xf32>
    %181 = arith.subf %177, %180 : vector<2x8x8xf32>
    %182 = math.exp %181 : vector<2x8x8xf32>
    %cst_99 = arith.constant dense<0.000000e+00> : vector<2x8xf32>
    %183 = vector.multi_reduction <add>, %182, %cst_99 [2] : vector<2x8x8xf32> to vector<2x8xf32>
    %184 = vector.shape_cast %183 : vector<2x8xf32> to vector<2x8x1xf32>
    %185 = tpu.reciprocal %184 {approx = true} : vector<2x8x1xf32> -> vector<2x8x1xf32>
    %186 = vector.broadcast %185 : vector<2x8x1xf32> to vector<2x8x8xf32>
    %187 = arith.mulf %182, %186 : vector<2x8x8xf32>
    %188 = vector.extract_strided_slice %113 {offsets = [0, 0, 24], sizes = [2, 8, 8], strides = [1, 1, 1]} : vector<2x8x32xf32> to vector<2x8x8xf32>
    "tpu.trace_start"() <{level = 10 : i32, message = "bqk,bkd->bqd"}> : () -> ()
    %cst_100 = arith.constant dense<0.000000e+00> : vector<2x8x8xf32>
    %189 = tpu.matmul %187, %188, %cst_100 {dimension_numbers = #tpu.dot_dimension_numbers<[2], [1], [1], [2], [0, 0, 0, 1, 1, 2], [0], [0]>} : vector<2x8x8xf32>, vector<2x8x8xf32>, vector<2x8x8xf32> -> vector<2x8x8xf32>
    "tpu.trace_stop"() : () -> ()
    %190 = tpu.concatenate %132, %151, %170, %189 in 2 : vector<2x8x8xf32>, vector<2x8x8xf32>, vector<2x8x8xf32>, vector<2x8x8xf32> -> vector<2x8x32xf32>
    %191 = vector.shape_cast %190 : vector<2x8x32xf32> to vector<16x32xf32>
    %c32 = arith.constant 32 : index
    %c0_101 = arith.constant 0 : index
    %192 = vector.load %arg4[%c32, %c0_101] : memref<384x128xf32, #tpu.memory_space<vmem>>, vector<32x32xf32>
    %cst_102 = arith.constant dense<0.000000e+00> : vector<16x32xf32>
    %193 = tpu.matmul %191, %192, %cst_102 {dimension_numbers = #tpu.dot_dimension_numbers<[1], [0], [0], [1], [0, 0, 1, 1], [], []>} : vector<16x32xf32>, vector<32x32xf32>, vector<16x32xf32> -> vector<16x32xf32>
    %194 = vector.extract_strided_slice %102 {offsets = [1, 0], sizes = [1, 32], strides = [1, 1]} : vector<8x128xf32> to vector<1x32xf32>
    %195 = vector.broadcast %194 : vector<1x32xf32> to vector<16x32xf32>
    %196 = arith.addf %193, %195 : vector<16x32xf32>
    %197 = arith.addf %196, %95 : vector<16x32xf32>
    %198 = vector.extract_strided_slice %102 {offsets = [4, 0], sizes = [1, 32], strides = [1, 1]} : vector<8x128xf32> to vector<1x32xf32>
    %199 = vector.extract_strided_slice %102 {offsets = [5, 0], sizes = [1, 32], strides = [1, 1]} : vector<8x128xf32> to vector<1x32xf32>
    %cst_103 = arith.constant dense<0.000000e+00> : vector<16xf32>
    %200 = vector.multi_reduction <add>, %197, %cst_103 [1] : vector<16x32xf32> to vector<16xf32>
    %201 = vector.shape_cast %200 : vector<16xf32> to vector<16x1xf32>
    %cst_104 = arith.constant 3.200000e+01 : f32
    %202 = vector.broadcast %cst_104 : f32 to vector<16x1xf32>
    %203 = arith.divf %201, %202 : vector<16x1xf32>
    %204 = vector.broadcast %203 : vector<16x1xf32> to vector<16x32xf32>
    %205 = arith.subf %197, %204 : vector<16x32xf32>
    %206 = arith.mulf %205, %205 : vector<16x32xf32>
    %cst_105 = arith.constant dense<0.000000e+00> : vector<16xf32>
    %207 = vector.multi_reduction <add>, %206, %cst_105 [1] : vector<16x32xf32> to vector<16xf32>
    %208 = vector.shape_cast %207 : vector<16xf32> to vector<16x1xf32>
    %cst_106 = arith.constant 3.200000e+01 : f32
    %209 = vector.broadcast %cst_106 : f32 to vector<16x1xf32>
    %210 = arith.divf %208, %209 : vector<16x1xf32>
    %cst_107 = arith.constant 9.99999996E-13 : f32
    %211 = vector.broadcast %cst_107 : f32 to vector<16x1xf32>
    %212 = arith.addf %210, %211 : vector<16x1xf32>
    %213 = math.rsqrt %212 : vector<16x1xf32>
    %214 = vector.broadcast %213 : vector<16x1xf32> to vector<16x32xf32>
    %215 = arith.mulf %205, %214 : vector<16x32xf32>
    %216 = vector.broadcast %198 : vector<1x32xf32> to vector<16x32xf32>
    %217 = arith.mulf %215, %216 : vector<16x32xf32>
    %218 = vector.broadcast %199 : vector<1x32xf32> to vector<16x32xf32>
    %219 = arith.addf %217, %218 : vector<16x32xf32>
    %c64 = arith.constant 64 : index
    %c0_108 = arith.constant 0 : index
    %220 = vector.load %arg4[%c64, %c0_108] : memref<384x128xf32, #tpu.memory_space<vmem>>, vector<32x64xf32>
    %cst_109 = arith.constant dense<0.000000e+00> : vector<16x64xf32>
    %221 = tpu.matmul %219, %220, %cst_109 {dimension_numbers = #tpu.dot_dimension_numbers<[1], [0], [0], [1], [0, 0, 1, 1], [], []>} : vector<16x32xf32>, vector<32x64xf32>, vector<16x64xf32> -> vector<16x64xf32>
    %222 = vector.extract_strided_slice %102 {offsets = [2, 0], sizes = [1, 64], strides = [1, 1]} : vector<8x128xf32> to vector<1x64xf32>
    %223 = vector.broadcast %222 : vector<1x64xf32> to vector<16x64xf32>
    %224 = arith.addf %221, %223 : vector<16x64xf32>
    %cst_110 = arith.constant 5.000000e-01 : f32
    %225 = vector.broadcast %cst_110 : f32 to vector<16x64xf32>
    %226 = arith.mulf %225, %224 : vector<16x64xf32>
    %cst_111 = arith.constant 4.471500e-02 : f32
    %227 = vector.broadcast %cst_111 : f32 to vector<16x64xf32>
    %228 = arith.mulf %227, %224 : vector<16x64xf32>
    %229 = arith.mulf %228, %224 : vector<16x64xf32>
    %230 = arith.mulf %229, %224 : vector<16x64xf32>
    %231 = arith.addf %224, %230 : vector<16x64xf32>
    %cst_112 = arith.constant 0.797884583 : f32
    %232 = vector.broadcast %cst_112 : f32 to vector<16x64xf32>
    %233 = arith.mulf %232, %231 : vector<16x64xf32>
    %234 = math.tanh %233 : vector<16x64xf32>
    %cst_113 = arith.constant 1.000000e+00 : f32
    %235 = vector.broadcast %cst_113 : f32 to vector<16x64xf32>
    %236 = arith.addf %235, %234 : vector<16x64xf32>
    %237 = arith.mulf %226, %236 : vector<16x64xf32>
    %c96 = arith.constant 96 : index
    %c0_114 = arith.constant 0 : index
    %238 = vector.load %arg4[%c96, %c0_114] : memref<384x128xf32, #tpu.memory_space<vmem>>, vector<64x32xf32>
    %cst_115 = arith.constant dense<0.000000e+00> : vector<16x32xf32>
    %239 = tpu.matmul %237, %238, %cst_115 {dimension_numbers = #tpu.dot_dimension_numbers<[1], [0], [0], [1], [0, 0, 1, 1], [], []>} : vector<16x64xf32>, vector<64x32xf32>, vector<16x32xf32> -> vector<16x32xf32>
    %240 = vector.extract_strided_slice %102 {offsets = [3, 0], sizes = [1, 32], strides = [1, 1]} : vector<8x128xf32> to vector<1x32xf32>
    %241 = vector.broadcast %240 : vector<1x32xf32> to vector<16x32xf32>
    %242 = arith.addf %239, %241 : vector<16x32xf32>
    %243 = arith.addf %242, %219 : vector<16x32xf32>
    %244 = vector.extract_strided_slice %102 {offsets = [6, 0], sizes = [1, 32], strides = [1, 1]} : vector<8x128xf32> to vector<1x32xf32>
    %245 = vector.extract_strided_slice %102 {offsets = [7, 0], sizes = [1, 32], strides = [1, 1]} : vector<8x128xf32> to vector<1x32xf32>
    %cst_116 = arith.constant dense<0.000000e+00> : vector<16xf32>
    %246 = vector.multi_reduction <add>, %243, %cst_116 [1] : vector<16x32xf32> to vector<16xf32>
    %247 = vector.shape_cast %246 : vector<16xf32> to vector<16x1xf32>
    %cst_117 = arith.constant 3.200000e+01 : f32
    %248 = vector.broadcast %cst_117 : f32 to vector<16x1xf32>
    %249 = arith.divf %247, %248 : vector<16x1xf32>
    %250 = vector.broadcast %249 : vector<16x1xf32> to vector<16x32xf32>
    %251 = arith.subf %243, %250 : vector<16x32xf32>
    %252 = arith.mulf %251, %251 : vector<16x32xf32>
    %cst_118 = arith.constant dense<0.000000e+00> : vector<16xf32>
    %253 = vector.multi_reduction <add>, %252, %cst_118 [1] : vector<16x32xf32> to vector<16xf32>
    %254 = vector.shape_cast %253 : vector<16xf32> to vector<16x1xf32>
    %cst_119 = arith.constant 3.200000e+01 : f32
    %255 = vector.broadcast %cst_119 : f32 to vector<16x1xf32>
    %256 = arith.divf %254, %255 : vector<16x1xf32>
    %cst_120 = arith.constant 9.99999996E-13 : f32
    %257 = vector.broadcast %cst_120 : f32 to vector<16x1xf32>
    %258 = arith.addf %256, %257 : vector<16x1xf32>
    %259 = math.rsqrt %258 : vector<16x1xf32>
    %260 = vector.broadcast %259 : vector<16x1xf32> to vector<16x32xf32>
    %261 = arith.mulf %251, %260 : vector<16x32xf32>
    %262 = vector.broadcast %244 : vector<1x32xf32> to vector<16x32xf32>
    %263 = arith.mulf %261, %262 : vector<16x32xf32>
    %264 = vector.broadcast %245 : vector<1x32xf32> to vector<16x32xf32>
    %265 = arith.addf %263, %264 : vector<16x32xf32>
    %c8_121 = arith.constant 8 : index
    %c0_122 = arith.constant 0 : index
    %266 = vector.load %arg5[%c8_121, %c0_122] : memref<24x128xf32, #tpu.memory_space<vmem>>, vector<8x128xf32>
    %c160 = arith.constant 160 : index
    %c0_123 = arith.constant 0 : index
    %267 = vector.load %arg4[%c160, %c0_123] : memref<384x128xf32, #tpu.memory_space<vmem>>, vector<32x128xf32>
    %cst_124 = arith.constant dense<0.000000e+00> : vector<16x128xf32>
    %268 = tpu.matmul %265, %267, %cst_124 {dimension_numbers = #tpu.dot_dimension_numbers<[1], [0], [0], [1], [0, 0, 1, 1], [], []>} : vector<16x32xf32>, vector<32x128xf32>, vector<16x128xf32> -> vector<16x128xf32>
    %269 = vector.extract_strided_slice %266 {offsets = [0, 0], sizes = [1, 128], strides = [1, 1]} : vector<8x128xf32> to vector<1x128xf32>
    %270 = vector.broadcast %269 : vector<1x128xf32> to vector<16x128xf32>
    %271 = arith.addf %268, %270 : vector<16x128xf32>
    %272 = vector.extract_strided_slice %271 {offsets = [0, 0], sizes = [16, 32], strides = [1, 1]} : vector<16x128xf32> to vector<16x32xf32>
    %273 = vector.shape_cast %272 : vector<16x32xf32> to vector<2x8x32xf32>
    %274 = vector.extract_strided_slice %271 {offsets = [0, 32], sizes = [16, 32], strides = [1, 1]} : vector<16x128xf32> to vector<16x32xf32>
    %275 = vector.shape_cast %274 : vector<16x32xf32> to vector<2x8x32xf32>
    %276 = vector.extract_strided_slice %271 {offsets = [0, 64], sizes = [16, 32], strides = [1, 1]} : vector<16x128xf32> to vector<16x32xf32>
    %277 = vector.shape_cast %276 : vector<16x32xf32> to vector<2x8x32xf32>
    %278 = vector.extract_strided_slice %273 {offsets = [0, 0, 0], sizes = [2, 8, 8], strides = [1, 1, 1]} : vector<2x8x32xf32> to vector<2x8x8xf32>
    %279 = vector.extract_strided_slice %275 {offsets = [0, 0, 0], sizes = [2, 8, 8], strides = [1, 1, 1]} : vector<2x8x32xf32> to vector<2x8x8xf32>
    "tpu.trace_start"() <{level = 10 : i32, message = "bqd,bkd->bqk"}> : () -> ()
    %cst_125 = arith.constant dense<0.000000e+00> : vector<2x8x8xf32>
    %280 = tpu.matmul %278, %279, %cst_125 {dimension_numbers = #tpu.dot_dimension_numbers<[2], [2], [1], [1], [0, 0, 0, 1, 1, 1], [0], [0]>} : vector<2x8x8xf32>, vector<2x8x8xf32>, vector<2x8x8xf32> -> vector<2x8x8xf32>
    "tpu.trace_stop"() : () -> ()
    %cst_126 = arith.constant 0.353553385 : f32
    %281 = vector.broadcast %cst_126 : f32 to vector<2x8x8xf32>
    %282 = arith.mulf %280, %281 : vector<2x8x8xf32>
    %283 = vector.broadcast %101 : vector<2x1x8xf32> to vector<2x8x8xf32>
    %284 = arith.addf %282, %283 : vector<2x8x8xf32>
    %cst_127 = arith.constant dense<0xFF800000> : vector<2x8xf32>
    %285 = vector.multi_reduction <maximumf>, %284, %cst_127 [2] : vector<2x8x8xf32> to vector<2x8xf32>
    %286 = vector.shape_cast %285 : vector<2x8xf32> to vector<2x8x1xf32>
    %287 = vector.broadcast %286 : vector<2x8x1xf32> to vector<2x8x8xf32>
    %288 = arith.subf %284, %287 : vector<2x8x8xf32>
    %289 = math.exp %288 : vector<2x8x8xf32>
    %cst_128 = arith.constant dense<0.000000e+00> : vector<2x8xf32>
    %290 = vector.multi_reduction <add>, %289, %cst_128 [2] : vector<2x8x8xf32> to vector<2x8xf32>
    %291 = vector.shape_cast %290 : vector<2x8xf32> to vector<2x8x1xf32>
    %292 = tpu.reciprocal %291 {approx = true} : vector<2x8x1xf32> -> vector<2x8x1xf32>
    %293 = vector.broadcast %292 : vector<2x8x1xf32> to vector<2x8x8xf32>
    %294 = arith.mulf %289, %293 : vector<2x8x8xf32>
    %295 = vector.extract_strided_slice %277 {offsets = [0, 0, 0], sizes = [2, 8, 8], strides = [1, 1, 1]} : vector<2x8x32xf32> to vector<2x8x8xf32>
    "tpu.trace_start"() <{level = 10 : i32, message = "bqk,bkd->bqd"}> : () -> ()
    %cst_129 = arith.constant dense<0.000000e+00> : vector<2x8x8xf32>
    %296 = tpu.matmul %294, %295, %cst_129 {dimension_numbers = #tpu.dot_dimension_numbers<[2], [1], [1], [2], [0, 0, 0, 1, 1, 2], [0], [0]>} : vector<2x8x8xf32>, vector<2x8x8xf32>, vector<2x8x8xf32> -> vector<2x8x8xf32>
    "tpu.trace_stop"() : () -> ()
    %297 = vector.extract_strided_slice %273 {offsets = [0, 0, 8], sizes = [2, 8, 8], strides = [1, 1, 1]} : vector<2x8x32xf32> to vector<2x8x8xf32>
    %298 = vector.extract_strided_slice %275 {offsets = [0, 0, 8], sizes = [2, 8, 8], strides = [1, 1, 1]} : vector<2x8x32xf32> to vector<2x8x8xf32>
    "tpu.trace_start"() <{level = 10 : i32, message = "bqd,bkd->bqk"}> : () -> ()
    %cst_130 = arith.constant dense<0.000000e+00> : vector<2x8x8xf32>
    %299 = tpu.matmul %297, %298, %cst_130 {dimension_numbers = #tpu.dot_dimension_numbers<[2], [2], [1], [1], [0, 0, 0, 1, 1, 1], [0], [0]>} : vector<2x8x8xf32>, vector<2x8x8xf32>, vector<2x8x8xf32> -> vector<2x8x8xf32>
    "tpu.trace_stop"() : () -> ()
    %cst_131 = arith.constant 0.353553385 : f32
    %300 = vector.broadcast %cst_131 : f32 to vector<2x8x8xf32>
    %301 = arith.mulf %299, %300 : vector<2x8x8xf32>
    %302 = vector.broadcast %101 : vector<2x1x8xf32> to vector<2x8x8xf32>
    %303 = arith.addf %301, %302 : vector<2x8x8xf32>
    %cst_132 = arith.constant dense<0xFF800000> : vector<2x8xf32>
    %304 = vector.multi_reduction <maximumf>, %303, %cst_132 [2] : vector<2x8x8xf32> to vector<2x8xf32>
    %305 = vector.shape_cast %304 : vector<2x8xf32> to vector<2x8x1xf32>
    %306 = vector.broadcast %305 : vector<2x8x1xf32> to vector<2x8x8xf32>
    %307 = arith.subf %303, %306 : vector<2x8x8xf32>
    %308 = math.exp %307 : vector<2x8x8xf32>
    %cst_133 = arith.constant dense<0.000000e+00> : vector<2x8xf32>
    %309 = vector.multi_reduction <add>, %308, %cst_133 [2] : vector<2x8x8xf32> to vector<2x8xf32>
    %310 = vector.shape_cast %309 : vector<2x8xf32> to vector<2x8x1xf32>
    %311 = tpu.reciprocal %310 {approx = true} : vector<2x8x1xf32> -> vector<2x8x1xf32>
    %312 = vector.broadcast %311 : vector<2x8x1xf32> to vector<2x8x8xf32>
    %313 = arith.mulf %308, %312 : vector<2x8x8xf32>
    %314 = vector.extract_strided_slice %277 {offsets = [0, 0, 8], sizes = [2, 8, 8], strides = [1, 1, 1]} : vector<2x8x32xf32> to vector<2x8x8xf32>
    "tpu.trace_start"() <{level = 10 : i32, message = "bqk,bkd->bqd"}> : () -> ()
    %cst_134 = arith.constant dense<0.000000e+00> : vector<2x8x8xf32>
    %315 = tpu.matmul %313, %314, %cst_134 {dimension_numbers = #tpu.dot_dimension_numbers<[2], [1], [1], [2], [0, 0, 0, 1, 1, 2], [0], [0]>} : vector<2x8x8xf32>, vector<2x8x8xf32>, vector<2x8x8xf32> -> vector<2x8x8xf32>
    "tpu.trace_stop"() : () -> ()
    %316 = vector.extract_strided_slice %273 {offsets = [0, 0, 16], sizes = [2, 8, 8], strides = [1, 1, 1]} : vector<2x8x32xf32> to vector<2x8x8xf32>
    %317 = vector.extract_strided_slice %275 {offsets = [0, 0, 16], sizes = [2, 8, 8], strides = [1, 1, 1]} : vector<2x8x32xf32> to vector<2x8x8xf32>
    "tpu.trace_start"() <{level = 10 : i32, message = "bqd,bkd->bqk"}> : () -> ()
    %cst_135 = arith.constant dense<0.000000e+00> : vector<2x8x8xf32>
    %318 = tpu.matmul %316, %317, %cst_135 {dimension_numbers = #tpu.dot_dimension_numbers<[2], [2], [1], [1], [0, 0, 0, 1, 1, 1], [0], [0]>} : vector<2x8x8xf32>, vector<2x8x8xf32>, vector<2x8x8xf32> -> vector<2x8x8xf32>
    "tpu.trace_stop"() : () -> ()
    %cst_136 = arith.constant 0.353553385 : f32
    %319 = vector.broadcast %cst_136 : f32 to vector<2x8x8xf32>
    %320 = arith.mulf %318, %319 : vector<2x8x8xf32>
    %321 = vector.broadcast %101 : vector<2x1x8xf32> to vector<2x8x8xf32>
    %322 = arith.addf %320, %321 : vector<2x8x8xf32>
    %cst_137 = arith.constant dense<0xFF800000> : vector<2x8xf32>
    %323 = vector.multi_reduction <maximumf>, %322, %cst_137 [2] : vector<2x8x8xf32> to vector<2x8xf32>
    %324 = vector.shape_cast %323 : vector<2x8xf32> to vector<2x8x1xf32>
    %325 = vector.broadcast %324 : vector<2x8x1xf32> to vector<2x8x8xf32>
    %326 = arith.subf %322, %325 : vector<2x8x8xf32>
    %327 = math.exp %326 : vector<2x8x8xf32>
    %cst_138 = arith.constant dense<0.000000e+00> : vector<2x8xf32>
    %328 = vector.multi_reduction <add>, %327, %cst_138 [2] : vector<2x8x8xf32> to vector<2x8xf32>
    %329 = vector.shape_cast %328 : vector<2x8xf32> to vector<2x8x1xf32>
    %330 = tpu.reciprocal %329 {approx = true} : vector<2x8x1xf32> -> vector<2x8x1xf32>
    %331 = vector.broadcast %330 : vector<2x8x1xf32> to vector<2x8x8xf32>
    %332 = arith.mulf %327, %331 : vector<2x8x8xf32>
    %333 = vector.extract_strided_slice %277 {offsets = [0, 0, 16], sizes = [2, 8, 8], strides = [1, 1, 1]} : vector<2x8x32xf32> to vector<2x8x8xf32>
    "tpu.trace_start"() <{level = 10 : i32, message = "bqk,bkd->bqd"}> : () -> ()
    %cst_139 = arith.constant dense<0.000000e+00> : vector<2x8x8xf32>
    %334 = tpu.matmul %332, %333, %cst_139 {dimension_numbers = #tpu.dot_dimension_numbers<[2], [1], [1], [2], [0, 0, 0, 1, 1, 2], [0], [0]>} : vector<2x8x8xf32>, vector<2x8x8xf32>, vector<2x8x8xf32> -> vector<2x8x8xf32>
    "tpu.trace_stop"() : () -> ()
    %335 = vector.extract_strided_slice %273 {offsets = [0, 0, 24], sizes = [2, 8, 8], strides = [1, 1, 1]} : vector<2x8x32xf32> to vector<2x8x8xf32>
    %336 = vector.extract_strided_slice %275 {offsets = [0, 0, 24], sizes = [2, 8, 8], strides = [1, 1, 1]} : vector<2x8x32xf32> to vector<2x8x8xf32>
    "tpu.trace_start"() <{level = 10 : i32, message = "bqd,bkd->bqk"}> : () -> ()
    %cst_140 = arith.constant dense<0.000000e+00> : vector<2x8x8xf32>
    %337 = tpu.matmul %335, %336, %cst_140 {dimension_numbers = #tpu.dot_dimension_numbers<[2], [2], [1], [1], [0, 0, 0, 1, 1, 1], [0], [0]>} : vector<2x8x8xf32>, vector<2x8x8xf32>, vector<2x8x8xf32> -> vector<2x8x8xf32>
    "tpu.trace_stop"() : () -> ()
    %cst_141 = arith.constant 0.353553385 : f32
    %338 = vector.broadcast %cst_141 : f32 to vector<2x8x8xf32>
    %339 = arith.mulf %337, %338 : vector<2x8x8xf32>
    %340 = vector.broadcast %101 : vector<2x1x8xf32> to vector<2x8x8xf32>
    %341 = arith.addf %339, %340 : vector<2x8x8xf32>
    %cst_142 = arith.constant dense<0xFF800000> : vector<2x8xf32>
    %342 = vector.multi_reduction <maximumf>, %341, %cst_142 [2] : vector<2x8x8xf32> to vector<2x8xf32>
    %343 = vector.shape_cast %342 : vector<2x8xf32> to vector<2x8x1xf32>
    %344 = vector.broadcast %343 : vector<2x8x1xf32> to vector<2x8x8xf32>
    %345 = arith.subf %341, %344 : vector<2x8x8xf32>
    %346 = math.exp %345 : vector<2x8x8xf32>
    %cst_143 = arith.constant dense<0.000000e+00> : vector<2x8xf32>
    %347 = vector.multi_reduction <add>, %346, %cst_143 [2] : vector<2x8x8xf32> to vector<2x8xf32>
    %348 = vector.shape_cast %347 : vector<2x8xf32> to vector<2x8x1xf32>
    %349 = tpu.reciprocal %348 {approx = true} : vector<2x8x1xf32> -> vector<2x8x1xf32>
    %350 = vector.broadcast %349 : vector<2x8x1xf32> to vector<2x8x8xf32>
    %351 = arith.mulf %346, %350 : vector<2x8x8xf32>
    %352 = vector.extract_strided_slice %277 {offsets = [0, 0, 24], sizes = [2, 8, 8], strides = [1, 1, 1]} : vector<2x8x32xf32> to vector<2x8x8xf32>
    "tpu.trace_start"() <{level = 10 : i32, message = "bqk,bkd->bqd"}> : () -> ()
    %cst_144 = arith.constant dense<0.000000e+00> : vector<2x8x8xf32>
    %353 = tpu.matmul %351, %352, %cst_144 {dimension_numbers = #tpu.dot_dimension_numbers<[2], [1], [1], [2], [0, 0, 0, 1, 1, 2], [0], [0]>} : vector<2x8x8xf32>, vector<2x8x8xf32>, vector<2x8x8xf32> -> vector<2x8x8xf32>
    "tpu.trace_stop"() : () -> ()
    %354 = tpu.concatenate %296, %315, %334, %353 in 2 : vector<2x8x8xf32>, vector<2x8x8xf32>, vector<2x8x8xf32>, vector<2x8x8xf32> -> vector<2x8x32xf32>
    %355 = vector.shape_cast %354 : vector<2x8x32xf32> to vector<16x32xf32>
    %c192 = arith.constant 192 : index
    %c0_145 = arith.constant 0 : index
    %356 = vector.load %arg4[%c192, %c0_145] : memref<384x128xf32, #tpu.memory_space<vmem>>, vector<32x32xf32>
    %cst_146 = arith.constant dense<0.000000e+00> : vector<16x32xf32>
    %357 = tpu.matmul %355, %356, %cst_146 {dimension_numbers = #tpu.dot_dimension_numbers<[1], [0], [0], [1], [0, 0, 1, 1], [], []>} : vector<16x32xf32>, vector<32x32xf32>, vector<16x32xf32> -> vector<16x32xf32>
    %358 = vector.extract_strided_slice %266 {offsets = [1, 0], sizes = [1, 32], strides = [1, 1]} : vector<8x128xf32> to vector<1x32xf32>
    %359 = vector.broadcast %358 : vector<1x32xf32> to vector<16x32xf32>
    %360 = arith.addf %357, %359 : vector<16x32xf32>
    %361 = arith.addf %360, %265 : vector<16x32xf32>
    %362 = vector.extract_strided_slice %266 {offsets = [4, 0], sizes = [1, 32], strides = [1, 1]} : vector<8x128xf32> to vector<1x32xf32>
    %363 = vector.extract_strided_slice %266 {offsets = [5, 0], sizes = [1, 32], strides = [1, 1]} : vector<8x128xf32> to vector<1x32xf32>
    %cst_147 = arith.constant dense<0.000000e+00> : vector<16xf32>
    %364 = vector.multi_reduction <add>, %361, %cst_147 [1] : vector<16x32xf32> to vector<16xf32>
    %365 = vector.shape_cast %364 : vector<16xf32> to vector<16x1xf32>
    %cst_148 = arith.constant 3.200000e+01 : f32
    %366 = vector.broadcast %cst_148 : f32 to vector<16x1xf32>
    %367 = arith.divf %365, %366 : vector<16x1xf32>
    %368 = vector.broadcast %367 : vector<16x1xf32> to vector<16x32xf32>
    %369 = arith.subf %361, %368 : vector<16x32xf32>
    %370 = arith.mulf %369, %369 : vector<16x32xf32>
    %cst_149 = arith.constant dense<0.000000e+00> : vector<16xf32>
    %371 = vector.multi_reduction <add>, %370, %cst_149 [1] : vector<16x32xf32> to vector<16xf32>
    %372 = vector.shape_cast %371 : vector<16xf32> to vector<16x1xf32>
    %cst_150 = arith.constant 3.200000e+01 : f32
    %373 = vector.broadcast %cst_150 : f32 to vector<16x1xf32>
    %374 = arith.divf %372, %373 : vector<16x1xf32>
    %cst_151 = arith.constant 9.99999996E-13 : f32
    %375 = vector.broadcast %cst_151 : f32 to vector<16x1xf32>
    %376 = arith.addf %374, %375 : vector<16x1xf32>
    %377 = math.rsqrt %376 : vector<16x1xf32>
    %378 = vector.broadcast %377 : vector<16x1xf32> to vector<16x32xf32>
    %379 = arith.mulf %369, %378 : vector<16x32xf32>
    %380 = vector.broadcast %362 : vector<1x32xf32> to vector<16x32xf32>
    %381 = arith.mulf %379, %380 : vector<16x32xf32>
    %382 = vector.broadcast %363 : vector<1x32xf32> to vector<16x32xf32>
    %383 = arith.addf %381, %382 : vector<16x32xf32>
    %c224 = arith.constant 224 : index
    %c0_152 = arith.constant 0 : index
    %384 = vector.load %arg4[%c224, %c0_152] : memref<384x128xf32, #tpu.memory_space<vmem>>, vector<32x64xf32>
    %cst_153 = arith.constant dense<0.000000e+00> : vector<16x64xf32>
    %385 = tpu.matmul %383, %384, %cst_153 {dimension_numbers = #tpu.dot_dimension_numbers<[1], [0], [0], [1], [0, 0, 1, 1], [], []>} : vector<16x32xf32>, vector<32x64xf32>, vector<16x64xf32> -> vector<16x64xf32>
    %386 = vector.extract_strided_slice %266 {offsets = [2, 0], sizes = [1, 64], strides = [1, 1]} : vector<8x128xf32> to vector<1x64xf32>
    %387 = vector.broadcast %386 : vector<1x64xf32> to vector<16x64xf32>
    %388 = arith.addf %385, %387 : vector<16x64xf32>
    %cst_154 = arith.constant 5.000000e-01 : f32
    %389 = vector.broadcast %cst_154 : f32 to vector<16x64xf32>
    %390 = arith.mulf %389, %388 : vector<16x64xf32>
    %cst_155 = arith.constant 4.471500e-02 : f32
    %391 = vector.broadcast %cst_155 : f32 to vector<16x64xf32>
    %392 = arith.mulf %391, %388 : vector<16x64xf32>
    %393 = arith.mulf %392, %388 : vector<16x64xf32>
    %394 = arith.mulf %393, %388 : vector<16x64xf32>
    %395 = arith.addf %388, %394 : vector<16x64xf32>
    %cst_156 = arith.constant 0.797884583 : f32
    %396 = vector.broadcast %cst_156 : f32 to vector<16x64xf32>
    %397 = arith.mulf %396, %395 : vector<16x64xf32>
    %398 = math.tanh %397 : vector<16x64xf32>
    %cst_157 = arith.constant 1.000000e+00 : f32
    %399 = vector.broadcast %cst_157 : f32 to vector<16x64xf32>
    %400 = arith.addf %399, %398 : vector<16x64xf32>
    %401 = arith.mulf %390, %400 : vector<16x64xf32>
    %c256 = arith.constant 256 : index
    %c0_158 = arith.constant 0 : index
    %402 = vector.load %arg4[%c256, %c0_158] : memref<384x128xf32, #tpu.memory_space<vmem>>, vector<64x32xf32>
    %cst_159 = arith.constant dense<0.000000e+00> : vector<16x32xf32>
    %403 = tpu.matmul %401, %402, %cst_159 {dimension_numbers = #tpu.dot_dimension_numbers<[1], [0], [0], [1], [0, 0, 1, 1], [], []>} : vector<16x64xf32>, vector<64x32xf32>, vector<16x32xf32> -> vector<16x32xf32>
    %404 = vector.extract_strided_slice %266 {offsets = [3, 0], sizes = [1, 32], strides = [1, 1]} : vector<8x128xf32> to vector<1x32xf32>
    %405 = vector.broadcast %404 : vector<1x32xf32> to vector<16x32xf32>
    %406 = arith.addf %403, %405 : vector<16x32xf32>
    %407 = arith.addf %406, %383 : vector<16x32xf32>
    %408 = vector.extract_strided_slice %266 {offsets = [6, 0], sizes = [1, 32], strides = [1, 1]} : vector<8x128xf32> to vector<1x32xf32>
    %409 = vector.extract_strided_slice %266 {offsets = [7, 0], sizes = [1, 32], strides = [1, 1]} : vector<8x128xf32> to vector<1x32xf32>
    %cst_160 = arith.constant dense<0.000000e+00> : vector<16xf32>
    %410 = vector.multi_reduction <add>, %407, %cst_160 [1] : vector<16x32xf32> to vector<16xf32>
    %411 = vector.shape_cast %410 : vector<16xf32> to vector<16x1xf32>
    %cst_161 = arith.constant 3.200000e+01 : f32
    %412 = vector.broadcast %cst_161 : f32 to vector<16x1xf32>
    %413 = arith.divf %411, %412 : vector<16x1xf32>
    %414 = vector.broadcast %413 : vector<16x1xf32> to vector<16x32xf32>
    %415 = arith.subf %407, %414 : vector<16x32xf32>
    %416 = arith.mulf %415, %415 : vector<16x32xf32>
    %cst_162 = arith.constant dense<0.000000e+00> : vector<16xf32>
    %417 = vector.multi_reduction <add>, %416, %cst_162 [1] : vector<16x32xf32> to vector<16xf32>
    %418 = vector.shape_cast %417 : vector<16xf32> to vector<16x1xf32>
    %cst_163 = arith.constant 3.200000e+01 : f32
    %419 = vector.broadcast %cst_163 : f32 to vector<16x1xf32>
    %420 = arith.divf %418, %419 : vector<16x1xf32>
    %cst_164 = arith.constant 9.99999996E-13 : f32
    %421 = vector.broadcast %cst_164 : f32 to vector<16x1xf32>
    %422 = arith.addf %420, %421 : vector<16x1xf32>
    %423 = math.rsqrt %422 : vector<16x1xf32>
    %424 = vector.broadcast %423 : vector<16x1xf32> to vector<16x32xf32>
    %425 = arith.mulf %415, %424 : vector<16x32xf32>
    %426 = vector.broadcast %408 : vector<1x32xf32> to vector<16x32xf32>
    %427 = arith.mulf %425, %426 : vector<16x32xf32>
    %428 = vector.broadcast %409 : vector<1x32xf32> to vector<16x32xf32>
    %429 = arith.addf %427, %428 : vector<16x32xf32>
    %430 = vector.shape_cast %429 : vector<16x32xf32> to vector<2x8x32xf32>
    %431 = vector.extract_strided_slice %430 {offsets = [0, 0, 0], sizes = [2, 1, 32], strides = [1, 1, 1]} : vector<2x8x32xf32> to vector<2x1x32xf32>
    %432 = vector.shape_cast %431 : vector<2x1x32xf32> to vector<2x32xf32>
    %c320 = arith.constant 320 : index
    %c0_165 = arith.constant 0 : index
    %433 = vector.load %arg4[%c320, %c0_165] : memref<384x128xf32, #tpu.memory_space<vmem>>, vector<32x32xf32>
    %cst_166 = arith.constant dense<0.000000e+00> : vector<2x32xf32>
    %434 = tpu.matmul %432, %433, %cst_166 {dimension_numbers = #tpu.dot_dimension_numbers<[1], [0], [0], [1], [0, 0, 1, 1], [], []>} : vector<2x32xf32>, vector<32x32xf32>, vector<2x32xf32> -> vector<2x32xf32>
    %435 = vector.broadcast %3 : vector<1x32xf32> to vector<2x32xf32>
    %436 = arith.addf %434, %435 : vector<2x32xf32>
    %437 = math.tanh %436 : vector<2x32xf32>
    %c352 = arith.constant 352 : index
    %c0_167 = arith.constant 0 : index
    %438 = vector.load %arg4[%c352, %c0_167] : memref<384x128xf32, #tpu.memory_space<vmem>>, vector<32x128xf32>
    %cst_168 = arith.constant dense<0.000000e+00> : vector<2x128xf32>
    %439 = tpu.matmul %437, %438, %cst_168 {dimension_numbers = #tpu.dot_dimension_numbers<[1], [0], [0], [1], [0, 0, 1, 1], [], []>} : vector<2x32xf32>, vector<32x128xf32>, vector<2x128xf32> -> vector<2x128xf32>
    %440 = vector.broadcast %4 : vector<1x128xf32> to vector<2x128xf32>
    %441 = arith.addf %439, %440 : vector<2x128xf32>
    %cst_169 = arith.constant 0.000000e+00 : f32
    %442 = vector.broadcast %cst_169 : f32 to vector<6x128xf32>
    %443 = tpu.concatenate %441, %442 in 0 : vector<2x128xf32>, vector<6x128xf32> -> vector<8x128xf32>
    %c0_170 = arith.constant 0 : index
    %c0_171 = arith.constant 0 : index
    %444 = vector.load %arg6[%c0_170, %c0_171] : memref<8x128xf32, #tpu.memory_space<vmem>>, vector<8x128xf32>
    tpu.vector_store %arg6[%c0_170, %c0_171], %443 {strides = array<i32>} : memref<8x128xf32, #tpu.memory_space<vmem>>, vector<8x128xf32>,
    return
  }
  func.func @transform_0(%arg0: i32, %arg1: memref<2x8xi32, #tpu.memory_space<smem>>) -> (i32, i32) {
    %c0_i32 = arith.constant 0 : i32
    %c0_i32_0 = arith.constant 0 : i32
    %c0_i32_1 = arith.constant 0 : i32
    return %c0_i32, %c0_i32_0 : i32, i32
  }
  func.func @transform_1(%arg0: i32, %arg1: memref<2x8xi32, #tpu.memory_space<smem>>) -> (i32, i32) {
    %c0_i32 = arith.constant 0 : i32
    %c0_i32_0 = arith.constant 0 : i32
    %c0_i32_1 = arith.constant 0 : i32
    return %c0_i32, %c0_i32_0 : i32, i32
  }
  func.func @transform_2(%arg0: i32, %arg1: memref<2x8xi32, #tpu.memory_space<smem>>) -> (i32, i32) {
    %c0_i32 = arith.constant 0 : i32
    %c0_i32_0 = arith.constant 0 : i32
    %c0_i32_1 = arith.constant 0 : i32
    return %c0_i32, %c0_i32_0 : i32, i32
  }
  func.func @transform_3(%arg0: i32, %arg1: memref<2x8xi32, #tpu.memory_space<smem>>) -> (i32, i32) {
    %c0_i32 = arith.constant 0 : i32
    %c0_i32_0 = arith.constant 0 : i32
    %c0_i32_1 = arith.constant 0 : i32
    return %c0_i32, %c0_i32_0 : i32, i32
  }
  func.func @transform_4(%arg0: i32, %arg1: memref<2x8xi32, #tpu.memory_space<smem>>) -> (i32, i32) {
    %c0_i32 = arith.constant 0 : i32
    %c0_i32_0 = arith.constant 0 : i32
    %c0_i32_1 = arith.constant 0 : i32
    return %c0_i32, %c0_i32_0 : i32, i32
  }
}

</mosaic_0001>

<bundles_post_ra>
// kernel: bert_sentiment_forward.1
= control target key start
LH: loop header
LB: loop body
LE: loop exit
PB: predicated region body
PF: predicated region fallthrough
CT: control target
= control target key end

     0   :  { %s5408_s0 = inlined_call_operand.vmem [shape: s32[2,8], index: 0, kind: input, shape index: {}]   ;;  %s5409_s1 = inlined_call_operand.vmem [shape: f32[2,8], index: 1, kind: input, shape index: {}]   ;;  %s5410_s2 = inlined_call_operand.vmem [shape: f32[112,32], index: 2, kind: input, shape index: {}]   ;;  %s5411_s3 = inlined_call_operand.hbm [shape: f32[384,128], index: 3, kind: input, shape index: {}]   ;;  %s5412_s4 = inlined_call_operand.vmem [shape: f32[24,128], index: 4, kind: input, shape index: {}]   ;;  %s5413_s5 = inlined_call_operand.vmem [shape: f32[8,128], index: 5, kind: output, shape index: {}]  }
   0x1   :  { %s10_s20 = sshll.u32 %s5408_s0, 4  ;;  %s11_s20 = int_to_ptr.vmem [resolvable:$true] %s10_s20 }
   0x2   :  { %s4731_s21 = scalar_lea.vmem %s11_s20, 32  ;;  %p4736_p1 = scmp.lt.s32.totalorder %s11_s20, %s11_s20 }
   0x3   :  { %p4732_p0 = scmp.ne.s32.totalorder %s11_s20, %s4731_s21  ;;  %p4737_p2 = scmp.lt.s32.totalorder %s4731_s21, %s4731_s21 }
   0x5   :  { %p4738_p3 = por %p4737_p2, %p4736_p1 }
   0x7   :  { %p4739_p4 = pnand %p4738_p3, %p4732_p0 }
   0x9   :  { %4742 = shalt.err (!%p4739_p4)  }
   0xa   :  { %s4769_s22 = smov [#allocation4]  }
   0xb   :  { %13 = dma.vmem_to_smem %s11_s20, 32, %s4769_s22, [#allocation3] }
   0xc   :  { %4765 = dma.done.wait [#allocation3], 32 }
   0xd   :  { %4766 = vsyncadd [#allocation3], 4294967264 }
   0xe   :  { %15 = sfence }
   0xf   :  { %16 = vsyncpa [#allocation6], 0  ;;  %s4770_s23 = smov [#allocation5]   ;;  %s4743_s0 = scalar_lea.hbm %s5411_s3, 6144 }
  0x10   :  { %s26_s24 = sshll.u32 %s4770_s23, 4  ;;  %p4744_p5 = scmp.ne.s32.totalorder %s5411_s3, %s4743_s0  ;;  %s27_s24 = int_to_ptr.vmem [resolvable:$true] %s26_s24 }
  0x11   :  { %p4747_p6 = scmp.lt.u32.totalorder %s4743_s0, %s5411_s3 }
  0x13   :  { %p4749_p7 = pnand %p4747_p6, %p4744_p5 }
  0x15   :  { %4752 = shalt.err (!%p4749_p7)
}
  0x16   :  { %s4753_s6 = scalar_lea.vmem %s27_s24, 6144  ;;  %p4758_p9 = scmp.lt.s32.totalorder %s27_s24, %s27_s24 }
  0x17   :  { %p4754_p8 = scmp.ne.s32.totalorder %s27_s24, %s4753_s6  ;;  %p4759_p10 = scmp.lt.s32.totalorder %s4753_s6, %s4753_s6 }
  0x19   :  { %p4760_p11 = por %p4759_p10, %p4758_p9 }
  0x1b   :  { %p4761_p12 = pnand %p4760_p11, %p4754_p8 }
  0x1d   :  { %4764 = shalt.err (!%p4761_p12)
}
  0x1e   :  { %s4771_s7 = smov 128   ;;  %s4772_s8 = smov 8  }
  0x1f   :  { %32 = dma.hbm_to_vmem [thread:$0]  %s5411_s3, 6144, %s27_s24, [#allocation6], %s4771_s7, %s4771_s7, %s4772_s8  }
  0x20   :  { %4767 = dma.done.wait [#allocation6], 6144  }
  0x21   :  { %4768 = vsyncadd [#allocation6], 4294961152  ;;  %s39_s11 = sld [smem:[#allocation4]]  ;;  %s4026_s12 = sld [smem:[#allocation4 + $0x1]]  ;;  %vm42_vm0 = vcmask 253952   ;;  %v104_v12 = vld [vmem:[%s5410_s2 + $0x68] sm:$0xff]  ;;  %v137_v41 = vlaneseq }
  0x22   :  { %s4027_s13 = sld [smem:[#allocation4 + $0x2]]  ;;  %s4028_s14 = sld [smem:[#allocation4 + $0x3]]  ;;  %vm109_vm1 = vcmask 261120   ;;  %v176_v33 = vld [vmem:[#allocation5] sm:$0xff]  ;;  %v177_v34 = vld [vmem:[#allocation5 + $0x8] sm:$0xff]  ;;  %v178_v35 = vld [vmem:[#allocation5 + $0x10] sm:$0xff] }
  0x23   :  { %s4029_s15 = sld [smem:[#allocation4 + $0x4]]  ;;  %s4030_s16 = sld [smem:[#allocation4 + $0x5]]  ;;  %v4523_v36 = vpack.c.bf16 %v177_v34, %v176_v33  ;;  %v179_v37 = vld [vmem:[#allocation5 + $0x18] sm:$0xff]  ;;  %v4919_v43 = vshrl.u32 %v137_v41, 7  ;;  %v38_v46 = vld [vmem:[%s5412_s4 + $0x10] sm:$0xff]  ;;  %v4773_v60 = vmov 0.0  }
  0x24   :  { %s4031_s17 = sld [smem:[#allocation4 + $0x6]]  ;;  %s4032_s18 = sld [smem:[#allocation4 + $0x7]]  ;;  %v4527_v38 = vpack.c.bf16 %v179_v37, %v178_v35  ;;  %4248 = vmatprep.subr.mxu1 %v4773_v60  ;;  %vm4774_vm2 = vmmov 0   ;;  %v4949_v61 = vld [vmem:[%s5412_s4] sm:$0xff]  ;;  %vm268_vm3 = vcmask 64512   ;;  %vm1639_vm4 = vcmask 195584  }
  0x25   :  { %s4836_s19 = sld [smem:[#allocation4 + $0x80]]  ;;  %s4838_s20 = sld [smem:[#allocation4 + $0x81]]  ;;  %4524 = vmatprep.subr.bf16.mxu0 %v4523_v36  ;;  %v4922_v44 = vsub.s32 0, %v4919_v43  ;;  %v4928_v48 = vsub.s32 1, %v4919_v43  ;;  %4250 = vmatprep.mubr.msk.f32.mxu1 %vm4774_vm2, %v4773_v60  ;;  %vm1636_vm5 = vcmask 130048   ;;  %vm1890_vm6 = vcmask 523264  }
  0x26   :  { %s4840_s21 = sld [smem:[#allocation4 + $0x82]]  ;;  %s4842_s22 = sld [smem:[#allocation4 + $0x83]]  ;;  %4526 = vmatpush3.bf16.msra.mxu0 %v4523_v36  ;;  %vm3846_vm7 = vcmask 1041409   ;;  %vm4002_vm8 = vcmask 1041408  }
  0x27   :  { %s40_s24 = scalar_lea.vmem %s5410_s2, %s39_s11  ;;  %s45_s0 = scalar_lea.vmem %s5410_s2, %s4026_s12  ;;  %4528 = vmatprep.subr.bf16.mxu0 %v4527_v38  ;;  %v140_v50 = vrot.slane %v38_v46, %v4922_v44  ;;  %v146_v53 = vrot.slane %v38_v46, %v4928_v48  ;;  %v183_v62 = vrot.slane %v4949_v61, %v4922_v44 }
  0x28   :  { %v41_v0 = vld [vmem:[%s40_s24] sm:$0x1]  ;;  %s49_s29 = scalar_lea.vmem %s5410_s2, %s4027_s13  ;;  %s53_s7 = scalar_lea.vmem %s5410_s2, %s4028_s14 }
  0x29   :  { %v46_v1 = vld [vmem:[%s45_s0] sm:$0x1]  ;;  %43 = vst.msk [vmem:[#allocation2] sm:$0x1] %vm42_vm0, %v41_v0  ;;  %s57_s11 = scalar_lea.vmem %s5410_s2, %s4029_s15  ;;  %s61_s13 = scalar_lea.vmem %s5410_s2, %s4030_s16 }
  0x2a   :  { %47 = vst.msk [vmem:[#allocation2 + $0x1] sm:$0x1] %vm42_vm0, %v46_v1  ;;  %v50_v2 = vld [vmem:[%s49_s29] sm:$0x1]  ;;  %s65_s24 = scalar_lea.vmem %s5410_s2, %s4031_s17  ;;  %s69_s15 = scalar_lea.vmem %s5410_s2, %s4032_s18  ;;  %4530 = vmatpush3.bf16.msra.mxu0 %v4527_v38 }
  0x2b   :  { %v54_v3 = vld [vmem:[%s53_s7] sm:$0x1]  ;;  %51 = vst.msk [vmem:[#allocation2 + $0x2] sm:$0x1] %vm42_vm0, %v50_v2  ;;  %s73_s27 = scalar_lea.vmem %s5410_s2, %s4836_s19  ;;  %s77_s30 = scalar_lea.vmem %s5410_s2, %s4838_s20  ;;  %4258 = vmatprep.subr.mxu0 %v4773_v60 }
  0x2c   :  { %55 = vst.msk [vmem:[#allocation2 + $0x3] sm:$0x1] %vm42_vm0, %v54_v3  ;;  %v58_v4 = vld [vmem:[%s57_s11] sm:$0x1]  ;;  %s81_s6 = scalar_lea.vmem %s5410_s2, %s4840_s21  ;;  %s85_s10 = scalar_lea.vmem %s5410_s2, %s4842_s22 }
  0x2d   :  { %v62_v5 = vld [vmem:[%s61_s13] sm:$0x1]  ;;  %59 = vst.msk [vmem:[#allocation2 + $0x4] sm:$0x1] %vm42_vm0, %v58_v4  ;;  %s4037_s19 = sld [smem:[#allocation4 + $0x84]]  ;;  %s4038_s20 = sld [smem:[#allocation4 + $0x85]] }
  0x2e   :  { %63 = vst.msk [vmem:[#allocation2 + $0x5] sm:$0x1] %vm42_vm0, %v62_v5  ;;  %v66_v6 = vld [vmem:[%s65_s24] sm:$0x1]  ;;  %s4039_s11 = sld [smem:[#allocation4 + $0x86]]  ;;  %s4040_s12 = sld [smem:[#allocation4 + $0x87]] }
  0x2f   :  { %v70_v7 = vld [vmem:[%s69_s15] sm:$0x1]  ;;  %67 = vst.msk [vmem:[#allocation2 + $0x6] sm:$0x1] %vm42_vm0, %v66_v6  ;;  %s4775_s18 = smov 96   ;;  %s4778_s9 = smov 88  }
  0x30   :  { %71 = vst.msk [vmem:[#allocation2 + $0x7] sm:$0x1] %vm42_vm0, %v70_v7  ;;  %v74_v8 = vld [vmem:[%s73_s27] sm:$0x1]  ;;  %v4776_v5 = vmov 1966171168  }
  0x31   :  { %v78_v9 = vld [vmem:[%s77_s30] sm:$0x1]  ;;  %75 = vst.msk [vmem:[#allocation2 + $0x8] sm:$0x1] %vm42_vm0, %v74_v8  ;;  %v154_v6 = vunpack.c.l.s4 %v4776_v5  ;;  %s4784_s3 = smov 72   ;;  %s4785_s21 = smov 104  }
  0x32   :  { %79 = vst.msk [vmem:[#allocation2 + $0x9] sm:$0x1] %vm42_vm0, %v78_v9  ;;  %v82_v10 = vld [vmem:[%s81_s6] sm:$0x1]  ;;  %s4786_s22 = smov 40   ;;  %s4787_s13 = smov 16  }
  0x33   :  { %v86_v11 = vld [vmem:[%s85_s10] sm:$0x1]  ;;  %83 = vst.msk [vmem:[#allocation2 + $0xa] sm:$0x1] %vm42_vm0, %v82_v10  ;;  %s89_s14 = scalar_lea.vmem %s5410_s2, %s4037_s19  ;;  %s93_s25 = scalar_lea.vmem %s5410_s2, %s4038_s20  ;;  %v155_v9 = vunpack.c.0.s8 %v154_v6 }
  0x34   :  { %87 = vst.msk [vmem:[#allocation2 + $0xb] sm:$0x1] %vm42_vm0, %v86_v11  ;;  %v90_v15 = vld [vmem:[%s89_s14] sm:$0x1]  ;;  %s97_s16 = scalar_lea.vmem %s5410_s2, %s4039_s11  ;;  %s101_s28 = scalar_lea.vmem %s5410_s2, %s4040_s12 }
  0x35   :  { %91 = vst.msk [vmem:[#allocation2 + $0xc] sm:$0x1] %vm42_vm0, %v90_v15  ;;  %v94_v16 = vld [vmem:[%s93_s25] sm:$0x1]  ;;  %v158_v11 = vsub.s32 %v155_v9, %v4919_v43  ;;  %s4779_s10 = smov 120   ;;  %s4780_s19 = smov 56  }
  0x36   :  { %v98_v17 = vld [vmem:[%s97_s16] sm:$0x1]  ;;  %95 = vst.msk [vmem:[#allocation2 + $0xd] sm:$0x1] %vm42_vm0, %v94_v16  ;;  %s4781_s20 = smov 80   ;;  %s4782_s11 = smov 112  }
  0x37   :  { %v105_v13 = vld [vmem:[#allocation2] sm:$0xff]  ;;  %99 = vst.msk [vmem:[#allocation2 + $0xe] sm:$0x1] %vm42_vm0, %v98_v17  ;;  %s4783_s12 = smov 48   ;;  %s4788_s14 = smov 24  }
  0x38   :  { %v107_v14 = vadd.f32 %v105_v13, %v104_v12  ;;  %v102_v19 = vld [vmem:[%s101_s28] sm:$0x1] }
  0x39   :  { %103 = vst.msk [vmem:[#allocation2 + $0xf] sm:$0x1] %vm42_vm0, %v102_v19  ;;  %v149_v7 = vld [vmem:[%s5409_s1] sm:$0x3]  ;;  %s4777_s1 = smov 64  }
  0x3a   :  { %v110_v18 = vsel %vm109_vm1, %v107_v14, 0.0  ;;  %v150_v8 = vsub.f32 1.0, %v149_v7 }
  0x3b   :  { %111 = vadd.xlane.f32.xlu0 %v110_v18 }
  0x3c   :  { %v151_v10 = vmul.f32 -10000.0, %v150_v8 }
  0x40   :  { %v106_v20 = vld [vmem:[#allocation2 + $0x8] sm:$0xff] }
  0x41   :  { %v108_v21 = vadd.f32 %v106_v20, %v104_v12  ;;  %v159_v12 = vrot.slane %v151_v10, %v158_v11 }
  0x43   :  { %v113_v22 = vsel %vm109_vm1, %v108_v21, 0.0  ;;  %v160_v13 = vcombine.high %v159_v12, %v159_v12 }
  0x44   :  { %114 = vadd.xlane.f32.xlu0 %v113_v22 }
  0x45   :  { %v174_v15 = vrot.slane %v160_v13, %v158_v11 }
  0x47   :  { %v4981_v20 = vrot.slane %v174_v15, %v4922_v44 }
  0xc8   :  { %v112_v23 = vpop.xlane.xlu0 %111 }
  0xc9   :  { %v117_v24 = vmul.f32 0.03125, %v112_v23 }
  0xcb   :  { %v119_v25 = vsub.f32 %v107_v14, %v117_v24  ;;  %v167_v14 = vrot.slane %v159_v12, %v158_v11 }
  0xcd   :  { %v121_v26 = vmul.f32 %v119_v25, %v119_v25  ;;  %v4978_v16 = vrot.slane %v167_v14, %v4922_v44 }
  0xcf   :  { %v123_v27 = vsel %vm109_vm1, %v121_v26, 0.0 }
  0xd0   :  { %124 = vadd.xlane.f32.xlu1 %v123_v27 }
  0xd1   :  { %v115_v28 = vpop.xlane.xlu0 %114 }
  0xd2   :  { %v118_v29 = vmul.f32 0.03125, %v115_v28 }
  0xd4   :  { %v120_v30 = vsub.f32 %v108_v21, %v118_v29 }
  0xd6   :  { %v122_v31 = vmul.f32 %v120_v30, %v120_v30 }
  0xd8   :  { %v126_v32 = vsel %vm109_vm1, %v122_v31, 0.0 }
  0xd9   :  { %127 = vadd.xlane.f32.xlu1 %v126_v32 }
 0x15d   :  { %v125_v39 = vpop.xlane.xlu1 %124 }
 0x15e   :  { %v129_v40 = vmul.f32 0.03125, %v125_v39 }
 0x160   :  { %v131_v42 = vadd.f32 1e-12, %v129_v40 }
 0x162   :  { %4636 = vrsqrt.f32 %v131_v42 }
 0x166   :  { %v128_v45 = vpop.xlane.xlu1 %127 }
 0x167   :  { %v130_v47 = vmul.f32 0.03125, %v128_v45 }
 0x169   :  { %v132_v49 = vadd.f32 1e-12, %v130_v47 }
 0x16b   :  { %4638 = vrsqrt.f32 %v132_v49 }
 0x16c   :  { %v4637_v51 = vpop.eup %4636 }
 0x16d   :  { %v135_v52 = vmul.f32 %v4637_v51, %v119_v25 }
 0x16f   :  { %v141_v54 = vmul.f32 %v140_v50, %v135_v52 }
 0x171   :  { %v4932_v55 = vadd.f32 %v146_v53, %v141_v54 }
 0x173   :  { %4245 = vmatprep.mubr.msk.f32.mxu0 %vm109_vm1, %v4932_v55 }
 0x175   :  { %v4639_v56 = vpop.eup %4638 }
 0x176   :  { %v136_v57 = vmul.f32 %v4639_v56, %v120_v30 }
 0x178   :  { %v142_v58 = vmul.f32 %v140_v50, %v136_v57 }
 0x17a   :  { %v4936_v59 = vadd.f32 %v146_v53, %v142_v58 }
 0x17c   :  { %4246 = vmatmul.mubr.msk.f32.vlgmr.msra.gmra.mrb[0].mxu0 %vm109_vm1, %v4936_v59 }
 0x17d   :  { %4260 = vmatprep.mubr.msk.f32.mxu0 %vm4774_vm2, %v4773_v60 }
 0x24f   :  { %v4247_v63 = vpop.f32.mrb[0].mxu0 }
 0x250   :  { %v4953_v0 = vadd.f32 %v4247_v63, %v183_v62  ;;  %v256_v1 = vpop.f32.mrb[1].mxu0 }
 0x251   :  { %v4955_v2 = vadd.f32 %v256_v1, %v183_v62 }
 0x252   :  { %344 = vrot.lane.b32.xlu1 %v4953_v0, %s4775_s18 }
 0x253   :  { %266 = vrot.lane.b32.xlu0 %v4955_v2, %s4775_s18 }
 0x2c4   :  { %v345_v4 = vpop.permute.xlu1 %344 }
 0x2c5   :  { %v267_v3 = vpop.permute.xlu0 %266 }
 0x2c6   :  { %4249 = vmatpush3.xpose.msk.msra.mxu1 %vm268_vm3, %v267_v3 }
 0x2c7   :  { %4253 = vmatprep.subr.mxu1 %v4773_v60 }
 0x2c9   :  { %4251 = vmatmul.mubr.msk.f32.vlgmr.msra.gmra.mrb[0].mxu1 %vm268_vm3, %v4955_v2 }
 0x2ca   :  { %4254 = vmatpush3.xpose.msk.msra.mxu1 %vm268_vm3, %v345_v4  ;;  %4255 = vmatprep.mubr.msk.f32.mxu1 %vm4774_vm2, %v4773_v60 }
 0x2cb   :  { %4263 = vmatprep.subr.mxu1 %v4773_v60 }
 0x2cd   :  { %4256 = vmatmul.mubr.msk.f32.vlgmr.msra.gmra.mrb[2].mxu1 %vm268_vm3, %v4953_v0 }
 0x2ce   :  { %4265 = vmatprep.mubr.msk.f32.mxu1 %vm4774_vm2, %v4773_v60 }
 0x39c   :  { %v339_v17 = vpop.f32.mrb[0].mxu1 }
 0x39d   :  { %v420_v18 = vmul.f32 0.35355338, %v339_v17  ;;  %v4252_v19 = vpop.f32.mrb[1].mxu1 }
 0x39f   :  { %v432_v21 = vadd.f32 %v4978_v16, %v420_v18 }
 0x3a0   :  { %v416_v22 = vpop.f32.mrb[2].mxu1 }
 0x3a1   :  { %v421_v23 = vmul.f32 0.35355338, %v416_v22  ;;  %v4257_v24 = vpop.f32.mrb[3].mxu1  ;;  %v434_v25 = vsel %vm268_vm3, %v432_v21, -inf }
 0x3a2   :  { %435 = vmax.xlane.f32.xlu1 %v434_v25 }
 0x3a3   :  { %v433_v26 = vadd.f32 %v4981_v20, %v421_v23 }
 0x3a5   :  { %v437_v27 = vsel %vm268_vm3, %v433_v26, -inf }
 0x3a6   :  { %438 = vmax.xlane.f32.xlu0 %v437_v27 }
 0x3b3   :  { %532 = vrot.lane.b32.xlu1 %v4953_v0, %s4777_s1 }
 0x3b7   :  { %610 = vrot.lane.b32.xlu1 %v4955_v2, %s4778_s9 }
 0x3bb   :  { %688 = vrot.lane.b32.xlu1 %v4953_v0, %s4778_s9 }
 0x3bc   :  { %456 = vrot.lane.b32.xlu0 %v4955_v2, %s4777_s1 }
 0x42f   :  { %v436_v28 = vpop.xlane.xlu1 %435 }
 0x430   :  { %v440_v29 = vsub.f32 %v432_v21, %v436_v28 }
 0x432   :  { %v442_v30 = vmul.f32 1.442695, %v440_v29 }
 0x433   :  { %v533_v31 = vpop.permute.xlu1 %532  ;;  %v439_v32 = vpop.xlane.xlu0 %438 }
 0x434   :  { %4640 = vpow2.f32 %v442_v30  ;;  %v441_v33 = vsub.f32 %v433_v26, %v439_v32  ;;  %4264 = vmatpush3.msra.mxu1 %v533_v31 }
 0x435   :  { %4273 = vmatprep.subr.mxu1 %v4773_v60 }
 0x436   :  { %v444_v34 = vmul.f32 1.442695, %v441_v33 }
 0x437   :  { %v457_v35 = vpop.permute.xlu0 %456  ;;  %v611_v40 = vpop.permute.xlu1 %610 }
 0x438   :  { %4642 = vpow2.f32 %v444_v34  ;;  %4259 = vmatpush3.msra.mxu0 %v457_v35 }
 0x439   :  { %4268 = vmatprep.subr.mxu0 %v4773_v60 }
 0x43b   :  { %v689_v41 = vpop.permute.xlu1 %688 }
 0x43e   :  { %v4641_v36 = vpop.eup %4640 }
 0x43f   :  { %v446_v37 = vsel %vm268_vm3, %v4641_v36, 0.0 }
 0x440   :  { %447 = vadd.xlane.f32.xlu0 %v446_v37 }
 0x442   :  { %v4643_v38 = vpop.eup %4642 }
 0x443   :  { %v449_v39 = vsel %vm268_vm3, %v4643_v38, 0.0 }
 0x444   :  { %450 = vadd.xlane.f32.xlu1 %v449_v39 }
 0x455   :  { %686 = vrot.lane.b32.xlu1 %v4953_v0, %s4779_s10 }
 0x456   :  { %608 = vrot.lane.b32.xlu0 %v4955_v2, %s4779_s10 }
 0x4cd   :  { %v448_v42 = vpop.xlane.xlu0 %447 }
 0x4ce   :  { %4644 = vrcp.f32 %v448_v42 }
 0x4d1   :  { %v451_v45 = vpop.xlane.xlu1 %450  ;;  %v609_v51 = vpop.permute.xlu0 %608 }
 0x4d2   :  { %4646 = vrcp.f32 %v451_v45 }
 0x4d5   :  { %v687_v52 = vpop.permute.xlu1 %686 }
 0x4d8   :  { %v4645_v46 = vpop.eup %4644 }
 0x4d9   :  { %v454_v47 = vmul.f32 %v4645_v46, %v4641_v36 }
 0x4db   :  { %4261 = vmatmul.mubr.msk.f32.vlgmr.msra.gmra.mrb[2].mxu0 %vm268_vm3, %v454_v47 }
 0x4dc   :  { %v4647_v49 = vpop.eup %4646  ;;  %4269 = vmatpush3.xpose.msk.msra.mxu0 %vm268_vm3, %v611_v40  ;;  %4270 = vmatprep.mubr.msk.f32.mxu0 %vm4774_vm2, %v4773_v60 }
 0x4dd   :  { %v455_v50 = vmul.f32 %v4647_v49, %v4643_v38  ;;  %4278 = vmatprep.subr.mxu0 %v4773_v60 }
 0x4df   :  { %4266 = vmatmul.mubr.msk.f32.vlgmr.msra.gmra.mrb[4].mxu1 %vm268_vm3, %v455_v50  ;;  %4271 = vmatmul.mubr.msk.f32.vlgmr.msra.gmra.mrb[4].mxu0 %vm268_vm3, %v609_v51 }
 0x4e0   :  { %4274 = vmatpush3.xpose.msk.msra.mxu1 %vm268_vm3, %v689_v41  ;;  %4275 = vmatprep.mubr.msk.f32.mxu1 %vm4774_vm2, %v4773_v60 }
 0x4e1   :  { %4283 = vmatprep.subr.mxu1 %v4773_v60  ;;  %4280 = vmatprep.mubr.msk.f32.mxu0 %vm4774_vm2, %v4773_v60 }
 0x4e3   :  { %4276 = vmatmul.mubr.msk.f32.vlgmr.msra.gmra.mrb[6].mxu1 %vm268_vm3, %v687_v52 }
 0x4e4   :  { %4285 = vmatprep.mubr.msk.f32.mxu1 %vm4774_vm2, %v4773_v60 }
 0x5ae   :  { %v5019_v53 = vpop.f32.mrb[2].mxu0 }
 0x5af   :  { %v4262_v54 = vpop.f32.mrb[3].mxu0 }
 0x5b2   :  { %v5021_v56 = vpop.f32.mrb[4].mxu1  ;;  %v682_v57 = vpop.f32.mrb[4].mxu0 }
 0x5b3   :  { %v764_v58 = vmul.f32 0.35355338, %v682_v57  ;;  %v4267_v62 = vpop.f32.mrb[5].mxu1  ;;  %v4272_v63 = vpop.f32.mrb[5].mxu0 }
 0x5b5   :  { %v766_v1 = vadd.f32 %v764_v58, %v4978_v16 }
 0x5b6   :  { %v760_v3 = vpop.f32.mrb[6].mxu1 }
 0x5b7   :  { %v765_v4 = vmul.f32 0.35355338, %v760_v3  ;;  %v4277_v5 = vpop.f32.mrb[7].mxu1  ;;  %v768_v6 = vsel %vm268_vm3, %v766_v1, -inf }
 0x5b8   :  { %769 = vmax.xlane.f32.xlu0 %v768_v6 }
 0x5b9   :  { %v767_v7 = vadd.f32 %v765_v4, %v4981_v20 }
 0x5bb   :  { %v771_v8 = vsel %vm268_vm3, %v767_v7, -inf }
 0x5bc   :  { %772 = vmax.xlane.f32.xlu1 %v771_v8 }
 0x5cd   :  { %866 = vrot.lane.b32.xlu1 %v4953_v0, %s4780_s19 }
 0x5ce   :  { %790 = vrot.lane.b32.xlu0 %v4955_v2, %s4780_s19 }
 0x5d1   :  { %944 = vrot.lane.b32.xlu1 %v4955_v2, %s4781_s20 }
 0x5d5   :  { %1022 = vrot.lane.b32.xlu1 %v4953_v0, %s4781_s20 }
 0x5d9   :  { %1020 = vrot.lane.b32.xlu1 %v4953_v0, %s4782_s11 }
 0x645   :  { %v770_v9 = vpop.xlane.xlu0 %769 }
 0x646   :  { %v774_v10 = vsub.f32 %v766_v1, %v770_v9 }
 0x648   :  { %v776_v11 = vmul.f32 1.442695, %v774_v10 }
 0x649   :  { %v791_v12 = vpop.permute.xlu0 %790  ;;  %v773_v13 = vpop.xlane.xlu1 %772 }
 0x64a   :  { %4648 = vpow2.f32 %v776_v11  ;;  %v775_v14 = vsub.f32 %v767_v7, %v773_v13  ;;  %4279 = vmatpush3.msra.mxu0 %v791_v12 }
 0x64b   :  { %4288 = vmatprep.subr.mxu0 %v4773_v60 }
 0x64c   :  { %v778_v15 = vmul.f32 1.442695, %v775_v14 }
 0x64d   :  { %v867_v17 = vpop.permute.xlu1 %866 }
 0x64e   :  { %4650 = vpow2.f32 %v778_v15  ;;  %4284 = vmatpush3.msra.mxu1 %v867_v17 }
 0x64f   :  { %4293 = vmatprep.subr.mxu1 %v4773_v60 }
 0x651   :  { %v945_v25 = vpop.permute.xlu1 %944 }
 0x654   :  { %v4649_v18 = vpop.eup %4648 }
 0x655   :  { %v780_v19 = vsel %vm268_vm3, %v4649_v18, 0.0  ;;  %v1023_v29 = vpop.permute.xlu1 %1022 }
 0x656   :  { %781 = vadd.xlane.f32.xlu0 %v780_v19 }
 0x658   :  { %v4651_v21 = vpop.eup %4650 }
 0x659   :  { %v783_v22 = vsel %vm268_vm3, %v4651_v21, 0.0  ;;  %v1021_v32 = vpop.permute.xlu1 %1020 }
 0x65a   :  { %784 = vadd.xlane.f32.xlu0 %v783_v22 }
 0x670   :  { %942 = vrot.lane.b32.xlu0 %v4955_v2, %s4782_s11 }
 0x6e3   :  { %v782_v23 = vpop.xlane.xlu0 %781 }
 0x6e4   :  { %4652 = vrcp.f32 %v782_v23 }
 0x6e7   :  { %v785_v24 = vpop.xlane.xlu0 %784 }
 0x6e8   :  { %4654 = vrcp.f32 %v785_v24 }
 0x6eb   :  { %v943_v31 = vpop.permute.xlu0 %942 }
 0x6ee   :  { %v4653_v26 = vpop.eup %4652 }
 0x6ef   :  { %v788_v27 = vmul.f32 %v4653_v26, %v4649_v18 }
 0x6f1   :  { %4281 = vmatmul.mubr.msk.f32.vlgmr.msra.gmra.mrb[6].mxu0 %vm268_vm3, %v788_v27 }
 0x6f2   :  { %v4655_v28 = vpop.eup %4654  ;;  %4289 = vmatpush3.xpose.msk.msra.mxu0 %vm268_vm3, %v945_v25  ;;  %4290 = vmatprep.mubr.msk.f32.mxu0 %vm4774_vm2, %v4773_v60 }
 0x6f3   :  { %v789_v30 = vmul.f32 %v4655_v28, %v4651_v21  ;;  %4298 = vmatprep.subr.mxu0 %v4773_v60 }
 0x6f5   :  { %4286 = vmatmul.mubr.msk.f32.vlgmr.msra.gmra.mrb[8].mxu1 %vm268_vm3, %v789_v30  ;;  %4291 = vmatmul.mubr.msk.f32.vlgmr.msra.gmra.mrb[8].mxu0 %vm268_vm3, %v943_v31 }
 0x6f6   :  { %4294 = vmatpush3.xpose.msk.msra.mxu1 %vm268_vm3, %v1023_v29  ;;  %4295 = vmatprep.mubr.msk.f32.mxu1 %vm4774_vm2, %v4773_v60 }
 0x6f7   :  { %4303 = vmatprep.subr.mxu1 %v4773_v60  ;;  %4300 = vmatprep.mubr.msk.f32.mxu0 %vm4774_vm2, %v4773_v60 }
 0x6f9   :  { %4296 = vmatmul.mubr.msk.f32.vlgmr.msra.gmra.mrb[10].mxu1 %vm268_vm3, %v1021_v32 }
 0x6fa   :  { %4305 = vmatprep.mubr.msk.f32.mxu1 %vm4774_vm2, %v4773_v60 }
 0x7c4   :  { %v5059_v33 = vpop.f32.mrb[6].mxu0 }
 0x7c5   :  { %v4282_v34 = vpop.f32.mrb[7].mxu0 }
 0x7c8   :  { %v5061_v35 = vpop.f32.mrb[8].mxu1  ;;  %v1016_v36 = vpop.f32.mrb[8].mxu0 }
 0x7c9   :  { %v1098_v37 = vmul.f32 0.35355338, %v1016_v36  ;;  %v4287_v38 = vpop.f32.mrb[9].mxu1  ;;  %v4292_v39 = vpop.f32.mrb[9].mxu0 }
 0x7cb   :  { %v1100_v40 = vadd.f32 %v1098_v37, %v4978_v16 }
 0x7cc   :  { %v1094_v41 = vpop.f32.mrb[10].mxu1 }
 0x7cd   :  { %v1099_v42 = vmul.f32 0.35355338, %v1094_v41  ;;  %v4297_v45 = vpop.f32.mrb[11].mxu1  ;;  %v1102_v46 = vsel %vm268_vm3, %v1100_v40, -inf }
 0x7ce   :  { %1103 = vmax.xlane.f32.xlu0 %v1102_v46 }
 0x7cf   :  { %v1101_v47 = vadd.f32 %v1099_v42, %v4981_v20 }
 0x7d1   :  { %v1105_v49 = vsel %vm268_vm3, %v1101_v47, -inf }
 0x7d2   :  { %1106 = vmax.xlane.f32.xlu1 %v1105_v49 }
 0x7e3   :  { %1200 = vrot.lane.b32.xlu1 %v4953_v0, %s4783_s12 }
 0x7e4   :  { %1124 = vrot.lane.b32.xlu0 %v4955_v2, %s4783_s12 }
 0x7e7   :  { %1278 = vrot.lane.b32.xlu1 %v4955_v2, %s4784_s3 }
 0x7eb   :  { %1356 = vrot.lane.b32.xlu1 %v4953_v0, %s4784_s3 }
 0x7ef   :  { %1354 = vrot.lane.b32.xlu1 %v4953_v0, %s4785_s21 }
 0x85b   :  { %v1104_v50 = vpop.xlane.xlu0 %1103 }
 0x85c   :  { %v1108_v51 = vsub.f32 %v1100_v40, %v1104_v50 }
 0x85e   :  { %v1110_v52 = vmul.f32 1.442695, %v1108_v51 }
 0x85f   :  { %v1125_v54 = vpop.permute.xlu0 %1124  ;;  %v1107_v57 = vpop.xlane.xlu1 %1106 }
 0x860   :  { %4656 = vpow2.f32 %v1110_v52  ;;  %v1109_v58 = vsub.f32 %v1101_v47, %v1107_v57  ;;  %4299 = vmatpush3.msra.mxu0 %v1125_v54  ;;  %v1642_v52 = vld [vmem:[#allocation5 + $0x20] sm:$0xff]  ;;  %v1643_v54 = vld [vmem:[#allocation5 + $0x28] sm:$0xff] }
 0x861   :  { %4308 = vmatprep.subr.mxu0 %v4773_v60  ;;  %v4531_v57 = vpack.c.bf16 %v1643_v54, %v1642_v52 }
 0x862   :  { %v1112_v62 = vmul.f32 1.442695, %v1109_v58  ;;  %v1645_v58 = vld [vmem:[#allocation5 + $0x38] sm:$0xff] }
 0x863   :  { %v1201_v63 = vpop.permute.xlu1 %1200 }
 0x864   :  { %4658 = vpow2.f32 %v1112_v62  ;;  %4304 = vmatpush3.msra.mxu1 %v1201_v63 }
 0x865   :  { %4313 = vmatprep.subr.mxu1 %v4773_v60 }
 0x867   :  { %v1279_v8 = vpop.permute.xlu1 %1278 }
 0x86a   :  { %v4657_v1 = vpop.eup %4656 }
 0x86b   :  { %v1114_v3 = vsel %vm268_vm3, %v4657_v1, 0.0  ;;  %v1357_v12 = vpop.permute.xlu1 %1356 }
 0x86c   :  { %1115 = vadd.xlane.f32.xlu0 %v1114_v3 }
 0x86e   :  { %v4659_v4 = vpop.eup %4658 }
 0x86f   :  { %v1117_v5 = vsel %vm268_vm3, %v4659_v4, 0.0  ;;  %v1355_v15 = vpop.permute.xlu1 %1354 }
 0x870   :  { %1118 = vadd.xlane.f32.xlu0 %v1117_v5 }
 0x886   :  { %1276 = vrot.lane.b32.xlu0 %v4955_v2, %s4785_s21 }
 0x8f9   :  { %v1116_v6 = vpop.xlane.xlu0 %1115 }
 0x8fa   :  { %4660 = vrcp.f32 %v1116_v6 }
 0x8fd   :  { %v1119_v7 = vpop.xlane.xlu0 %1118 }
 0x8fe   :  { %4662 = vrcp.f32 %v1119_v7 }
 0x901   :  { %v1277_v14 = vpop.permute.xlu0 %1276 }
 0x904   :  { %v4661_v9 = vpop.eup %4660 }
 0x905   :  { %v1122_v10 = vmul.f32 %v4661_v9, %v4657_v1 }
 0x907   :  { %4301 = vmatmul.mubr.msk.f32.vlgmr.msra.gmra.mrb[10].mxu0 %vm268_vm3, %v1122_v10 }
 0x908   :  { %v4663_v11 = vpop.eup %4662  ;;  %4309 = vmatpush3.xpose.msk.msra.mxu0 %vm268_vm3, %v1279_v8  ;;  %4310 = vmatprep.mubr.msk.f32.mxu0 %vm4774_vm2, %v4773_v60 }
 0x909   :  { %v1123_v13 = vmul.f32 %v4663_v11, %v4659_v4  ;;  %4318 = vmatprep.subr.mxu0 %v4773_v60 }
 0x90b   :  { %4306 = vmatmul.mubr.msk.f32.vlgmr.msra.gmra.mrb[12].mxu1 %vm268_vm3, %v1123_v13  ;;  %4311 = vmatmul.mubr.msk.f32.vlgmr.msra.gmra.mrb[12].mxu0 %vm268_vm3, %v1277_v14 }
 0x90c   :  { %4314 = vmatpush3.xpose.msk.msra.mxu1 %vm268_vm3, %v1357_v12  ;;  %4315 = vmatprep.mubr.msk.f32.mxu1 %vm4774_vm2, %v4773_v60 }
 0x90d   :  { %4323 = vmatprep.subr.mxu1 %v4773_v60  ;;  %4320 = vmatprep.mubr.msk.f32.mxu0 %vm4774_vm2, %v4773_v60 }
 0x90f   :  { %4316 = vmatmul.mubr.msk.f32.vlgmr.msra.gmra.mrb[14].mxu1 %vm268_vm3, %v1355_v15 }
 0x910   :  { %4325 = vmatprep.mubr.msk.f32.mxu1 %vm4774_vm2, %v4773_v60 }
 0x9da   :  { %v1196_v17 = vpop.f32.mrb[10].mxu0 }
 0x9db   :  { %v4302_v18 = vpop.f32.mrb[11].mxu0 }
 0x9de   :  { %v1272_v19 = vpop.f32.mrb[12].mxu1  ;;  %v1350_v21 = vpop.f32.mrb[12].mxu0 }
 0x9df   :  { %v1432_v22 = vmul.f32 0.35355338, %v1350_v21  ;;  %v4307_v23 = vpop.f32.mrb[13].mxu1  ;;  %v4312_v24 = vpop.f32.mrb[13].mxu0 }
 0x9e1   :  { %v1434_v25 = vadd.f32 %v1432_v22, %v4978_v16 }
 0x9e2   :  { %v1428_v26 = vpop.f32.mrb[14].mxu1 }
 0x9e3   :  { %v1433_v27 = vmul.f32 0.35355338, %v1428_v26  ;;  %v4317_v28 = vpop.f32.mrb[15].mxu1  ;;  %v1436_v29 = vsel %vm268_vm3, %v1434_v25, -inf }
 0x9e4   :  { %1437 = vmax.xlane.f32.xlu0 %v1436_v29 }
 0x9e5   :  { %v1435_v30 = vadd.f32 %v1433_v27, %v4981_v20 }
 0x9e7   :  { %v1439_v31 = vsel %vm268_vm3, %v1435_v30, -inf }
 0x9e8   :  { %1440 = vmax.xlane.f32.xlu1 %v1439_v31 }
 0x9f9   :  { %1534 = vrot.lane.b32.xlu1 %v4953_v0, %s4786_s22 }
 0x9fd   :  { %1612 = vrot.lane.b32.xlu1 %v5059_v33, %s4772_s8 }
 0xa01   :  { %1614 = vrot.lane.b32.xlu1 %v5061_v35, %s4772_s8 }
 0xa05   :  { %1622 = vrot.lane.b32.xlu1 %v1272_v19, %s4787_s13 }
 0xa71   :  { %v1438_v32 = vpop.xlane.xlu0 %1437 }
 0xa72   :  { %v1442_v34 = vsub.f32 %v1434_v25, %v1438_v32 }
 0xa74   :  { %v1444_v36 = vmul.f32 1.442695, %v1442_v34 }
 0xa75   :  { %v1441_v37 = vpop.xlane.xlu1 %1440 }
 0xa76   :  { %4664 = vpow2.f32 %v1444_v36  ;;  %v1443_v38 = vsub.f32 %v1435_v30, %v1441_v37  ;;  %v1772_v37 = vld [vmem:[#allocation5 + $0x48] sm:$0xff] }
 0xa78   :  { %v1446_v39 = vmul.f32 1.442695, %v1443_v38 }
 0xa79   :  { %v1535_v40 = vpop.permute.xlu1 %1534 }
 0xa7a   :  { %4666 = vpow2.f32 %v1446_v39  ;;  %4324 = vmatpush3.msra.mxu1 %v1535_v40  ;;  %v1773_v39 = vld [vmem:[#allocation5 + $0x50] sm:$0xff]  ;;  %v1774_v40 = vld [vmem:[#allocation5 + $0x58] sm:$0xff] }
 0xa7d   :  { %v1613_v5 = vpop.permute.xlu1 %1612 }
 0xa7e   :  { %v1634_v8 = vsel %vm268_vm3, %v5019_v53, %v1613_v5  ;;  %v1649_v53 = vrot.slane %v4949_v61, %v4928_v48 }
 0xa80   :  { %v4665_v0 = vpop.eup %4664 }
 0xa81   :  { %v1448_v41 = vsel %vm268_vm3, %v4665_v0, 0.0  ;;  %v1615_v6 = vpop.permute.xlu1 %1614 }
 0xa82   :  { %1449 = vadd.xlane.f32.xlu0 %v1448_v41  ;;  %v1635_v13 = vsel %vm268_vm3, %v5021_v56, %v1615_v6  ;;  %v1880_v6 = vld [vmem:[#allocation5 + $0x70] sm:$0xff] }
 0xa84   :  { %v4667_v33 = vpop.eup %4666 }
 0xa85   :  { %v1451_v35 = vsel %vm268_vm3, %v4667_v33, 0.0  ;;  %v1623_v9 = vpop.permute.xlu1 %1622 }
 0xa86   :  { %1452 = vadd.xlane.f32.xlu0 %v1451_v35  ;;  %v1638_v14 = vsel %vm1636_vm5, %v1635_v13, %v1623_v9  ;;  %v1882_v9 = vld [vmem:[#allocation5 + $0x80] sm:$0xff]  ;;  %v1885_v13 = vld [vmem:[#allocation5 + $0x98] sm:$0xff] }
 0xa9c   :  { %1458 = vrot.lane.b32.xlu0 %v4955_v2, %s4786_s22  ;;  %v1644_v2 = vld [vmem:[#allocation5 + $0x30] sm:$0xff] }
 0xa9d   :  { %v4535_v62 = vpack.c.bf16 %v1645_v58, %v1644_v2 }
 0xaa0   :  { %1620 = vrot.lane.b32.xlu0 %v1196_v17, %s4787_s13 }
 0xb0f   :  { %v1450_v42 = vpop.xlane.xlu0 %1449 }
 0xb10   :  { %4668 = vrcp.f32 %v1450_v42 }
 0xb13   :  { %v1453_v45 = vpop.xlane.xlu0 %1452 }
 0xb14   :  { %4670 = vrcp.f32 %v1453_v45 }
 0xb17   :  { %v1459_v46 = vpop.permute.xlu0 %1458 }
 0xb18   :  { %4319 = vmatpush3.msra.mxu0 %v1459_v46 }
 0xb19   :  { %4532 = vmatprep.subr.bf16.mxu0 %v4531_v57 }
 0xb1a   :  { %v4669_v47 = vpop.eup %4668 }
 0xb1b   :  { %v1456_v49 = vmul.f32 %v4669_v47, %v4665_v0  ;;  %v1621_v7 = vpop.permute.xlu0 %1620  ;;  %v4543_v0 = vpack.c.bf16 %v1774_v40, %v1773_v39  ;;  %v1761_v47 = vsub.s32 4, %v4919_v43  ;;  %v5161_v39 = vsub.s32 3, %v4919_v43 }
 0xb1c   :  { %v1637_v10 = vsel %vm1636_vm5, %v1634_v8, %v1621_v7  ;;  %v1881_v7 = vld [vmem:[#allocation5 + $0x78] sm:$0xff] }
 0xb1d   :  { %4321 = vmatmul.mubr.msk.f32.vlgmr.msra.gmra.mrb[14].mxu0 %vm268_vm3, %v1456_v49  ;;  %v1767_v49 = vsub.s32 5, %v4919_v43  ;;  %v4551_v8 = vpack.c.bf16 %v1881_v7, %v1880_v6  ;;  %v1889_v40 = vrot.slane %v4949_v61, %v5161_v39  ;;  %v2015_v7 = vld [vmem:[#allocation5 + $0xb0] sm:$0xff] }
 0xb1e   :  { %v4671_v50 = vpop.eup %4670  ;;  %4534 = vmatpush3.bf16.msra.mxu0 %v4531_v57 }
 0xb1f   :  { %v1457_v51 = vmul.f32 %v4671_v50, %v4667_v33  ;;  %4536 = vmatprep.subr.bf16.mxu0 %v4535_v62  ;;  %v1762_v50 = vrot.slane %v4949_v61, %v1761_v47  ;;  %v1768_v54 = vrot.slane %v4949_v61, %v1767_v49 }
 0xb21   :  { %4326 = vmatmul.mubr.msk.f32.vlgmr.msra.gmra.mrb[16].mxu1 %vm268_vm3, %v1457_v51 }
 0xb22   :  { %4538 = vmatpush3.bf16.msra.mxu0 %v4535_v62 }
 0xbf0   :  { %v1530_v63 = vpop.f32.mrb[14].mxu0 }
 0xbf1   :  { %1628 = vrot.lane.b32.xlu0 %v1530_v63, %s4788_s14  ;;  %v4322_v1 = vpop.f32.mrb[15].mxu0 }
 0xbf4   :  { %v1606_v3 = vpop.f32.mrb[16].mxu1 }
 0xbf5   :  { %1630 = vrot.lane.b32.xlu1 %v1606_v3, %s4788_s14  ;;  %v4327_v4 = vpop.f32.mrb[17].mxu1  ;;  %v1878_v3 = vld [vmem:[#allocation5 + $0x60] sm:$0xff] }
 0xbf6   :  { %v1879_v4 = vld [vmem:[#allocation5 + $0x68] sm:$0xff] }
 0xbf7   :  { %v4547_v5 = vpack.c.bf16 %v1879_v4, %v1878_v3 }
 0xbf9   :  { %4548 = vmatprep.subr.bf16.mxu0 %v4547_v5 }
 0xc63   :  { %v1629_v11 = vpop.permute.xlu0 %1628 }
 0xc64   :  { %v1640_v12 = vsel %vm1639_vm4, %v1637_v10, %v1629_v11  ;;  %v1883_v10 = vld [vmem:[#allocation5 + $0x88] sm:$0xff] }
 0xc65   :  { %4336 = vmatprep.mubr.msk.f32.mxu0 %vm109_vm1, %v1640_v12  ;;  %v4555_v11 = vpack.c.bf16 %v1883_v10, %v1882_v9  ;;  %v1884_v12 = vld [vmem:[#allocation5 + $0x90] sm:$0xff] }
 0xc67   :  { %v1631_v15 = vpop.permute.xlu1 %1630 }
 0xc68   :  { %v1641_v17 = vsel %vm1639_vm4, %v1638_v14, %v1631_v15  ;;  %v4559_v14 = vpack.c.bf16 %v1885_v13, %v1884_v12  ;;  %v5152_v15 = vsub.s32 2, %v4919_v43 }
 0xc69   :  { %4337 = vmatmul.mubr.msk.f32.vlgmr.msra.gmra.mrb[16].mxu0 %vm109_vm1, %v1641_v17 }
 0xc6a   :  { %4550 = vmatpush3.bf16.msra.mxu0 %v4547_v5  ;;  %v1778_v17 = vrot.slane %v4949_v61, %v5152_v15  ;;  %v2014_v5 = vld [vmem:[#allocation5 + $0xa8] sm:$0xff] }
 0xc6b   :  { %4552 = vmatprep.subr.bf16.mxu0 %v4551_v8 }
 0xc6e   :  { %4554 = vmatpush3.bf16.msra.mxu0 %v4551_v8  ;;  %v2016_v8 = vld [vmem:[#allocation5 + $0xb8] sm:$0xff] }
 0xc6f   :  { %4556 = vmatprep.subr.bf16.mxu0 %v4555_v11  ;;  %v4567_v9 = vpack.c.bf16 %v2016_v8, %v2015_v7 }
 0xc72   :  { %4558 = vmatpush3.bf16.msra.mxu0 %v4555_v11 }
 0xc73   :  { %4560 = vmatprep.subr.bf16.mxu0 %v4559_v14 }
 0xc76   :  { %4562 = vmatpush3.bf16.msra.mxu0 %v4559_v14 }
 0xc77   :  { %4390 = vmatprep.subr.mxu0 %v4773_v60 }
 0xd3c   :  { %v4338_v18 = vpop.f32.mrb[16].mxu0 }
 0xd3d   :  { %v1728_v19 = vadd.f32 %v4338_v18, %v1649_v53  ;;  %v1722_v21 = vpop.f32.mrb[17].mxu0 }
 0xd3e   :  { %v1723_v22 = vadd.f32 %v1722_v21, %v1649_v53 }
 0xd3f   :  { %v1732_v23 = vadd.f32 %v1728_v19, %v4936_v59 }
 0xd40   :  { %v1731_v24 = vadd.f32 %v1723_v22, %v4932_v55  ;;  %v1771_v55 = vld [vmem:[#allocation5 + $0x40] sm:$0xff] }
 0xd41   :  { %v1736_v56 = vsel %vm109_vm1, %v1732_v23, 0.0  ;;  %v4539_v38 = vpack.c.bf16 %v1772_v37, %v1771_v55 }
 0xd42   :  { %1737 = vadd.xlane.f32.xlu1 %v1736_v56  ;;  %v1733_v25 = vsel %vm109_vm1, %v1731_v24, 0.0 }
 0xd43   :  { %1734 = vadd.xlane.f32.xlu0 %v1733_v25  ;;  %4540 = vmatprep.subr.bf16.mxu1 %v4539_v38 }
 0xd44   :  { %4542 = vmatpush3.bf16.msra.mxu1 %v4539_v38 }
 0xd45   :  { %4544 = vmatprep.subr.bf16.mxu1 %v4543_v0 }
 0xd48   :  { %4546 = vmatpush3.bf16.msra.mxu1 %v4543_v0 }
 0xdcf   :  { %v1738_v26 = vpop.xlane.xlu1 %1737 }
 0xdd0   :  { %v1740_v27 = vmul.f32 0.03125, %v1738_v26  ;;  %v1735_v28 = vpop.xlane.xlu0 %1734 }
 0xdd1   :  { %v1739_v29 = vmul.f32 0.03125, %v1735_v28 }
 0xdd2   :  { %v1742_v30 = vsub.f32 %v1732_v23, %v1740_v27 }
 0xdd3   :  { %v1741_v31 = vsub.f32 %v1731_v24, %v1739_v29 }
 0xdd4   :  { %v1744_v36 = vmul.f32 %v1742_v30, %v1742_v30 }
 0xdd5   :  { %v1743_v32 = vmul.f32 %v1741_v31, %v1741_v31 }
 0xdd6   :  { %v1748_v59 = vsel %vm109_vm1, %v1744_v36, 0.0 }
 0xdd7   :  { %v1745_v34 = vsel %vm109_vm1, %v1743_v32, 0.0 }
 0xdd8   :  { %1746 = vadd.xlane.f32.xlu0 %v1745_v34 }
 0xddc   :  { %1749 = vadd.xlane.f32.xlu0 %v1748_v59 }
 0xe65   :  { %v1747_v41 = vpop.xlane.xlu0 %1746 }
 0xe66   :  { %v1751_v33 = vmul.f32 0.03125, %v1747_v41 }
 0xe68   :  { %v1753_v35 = vadd.f32 1e-12, %v1751_v33 }
 0xe69   :  { %v1750_v42 = vpop.xlane.xlu0 %1749 }
 0xe6a   :  { %4672 = vrsqrt.f32 %v1753_v35  ;;  %v1752_v45 = vmul.f32 0.03125, %v1750_v42 }
 0xe6c   :  { %v1754_v46 = vadd.f32 1e-12, %v1752_v45 }
 0xe6e   :  { %4674 = vrsqrt.f32 %v1754_v46 }
 0xe74   :  { %v4673_v51 = vpop.eup %4672 }
 0xe75   :  { %v1757_v52 = vmul.f32 %v4673_v51, %v1741_v31 }
 0xe77   :  { %v1763_v57 = vmul.f32 %v1762_v50, %v1757_v52 }
 0xe78   :  { %v4675_v2 = vpop.eup %4674 }
 0xe79   :  { %v1758_v58 = vmul.f32 %v4675_v2, %v1742_v30  ;;  %v5145_v62 = vadd.f32 %v1768_v54, %v1763_v57 }
 0xe7b   :  { %v1764_v63 = vmul.f32 %v1762_v50, %v1758_v58  ;;  %4347 = vmatprep.mubr.msk.f32.mxu1 %vm109_vm1, %v5145_v62 }
 0xe7d   :  { %v1770_v1 = vadd.f32 %v1768_v54, %v1764_v63 }
 0xe7f   :  { %4348 = vmatmul.mubr.msk.f32.vlgmr.msra.gmra.mrb[18].mxu1 %vm109_vm1, %v1770_v1 }
 0xf52   :  { %v4349_v53 = vpop.f32.mrb[18].mxu1 }
 0xf53   :  { %v1857_v18 = vadd.f32 %v4349_v53, %v1778_v17  ;;  %v1851_v19 = vpop.f32.mrb[19].mxu1  ;;  %v2002_v53 = vsub.s32 6, %v4919_v43 }
 0xf54   :  { %v1852_v21 = vadd.f32 %v1851_v19, %v1778_v17 }
 0xf55   :  { %v1863_v22 = vmul.f32 0.044715, %v1857_v18  ;;  %v1861_v55 = vmul.f32 0.5, %v1857_v18  ;;  %v2003_v19 = vrot.slane %v4949_v61, %v2002_v53 }
 0xf56   :  { %v1862_v23 = vmul.f32 0.044715, %v1852_v21  ;;  %v1860_v36 = vmul.f32 0.5, %v1852_v21 }
 0xf57   :  { %v1865_v24 = vmul.f32 %v1863_v22, %v1857_v18 }
 0xf58   :  { %v1864_v56 = vmul.f32 %v1862_v23, %v1852_v21 }
 0xf59   :  { %v1867_v25 = vmul.f32 %v1865_v24, %v1857_v18 }
 0xf5a   :  { %v1866_v26 = vmul.f32 %v1864_v56, %v1852_v21 }
 0xf5b   :  { %v1869_v27 = vadd.f32 %v1867_v25, %v1857_v18  ;;  %v2008_v18 = vsub.s32 7, %v4919_v43  ;;  %v3924_v43 = vld [vmem:[#allocation5 + $0x178] sm:$0xff] }
 0xf5c   :  { %v1868_v28 = vadd.f32 %v1866_v26, %v1852_v21 }
 0xf5d   :  { %v1871_v29 = vmul.f32 0.7978846, %v1869_v27  ;;  %v2009_v56 = vrot.slane %v4949_v61, %v2008_v18 }
 0xf5e   :  { %v1870_v30 = vmul.f32 0.7978846, %v1868_v28 }
 0xf5f   :  { %4676 = vtanh.f32 %v1871_v29  ;;  %v5192_v29 = vld [vmem:[%s5412_s4 + $0x8] sm:$0xff] }
 0xf60   :  { %4678 = vtanh.f32 %v1870_v30  ;;  %v2020_v61 = vrot.slane %v5192_v29, %v4922_v44 }
 0xf69   :  { %v4677_v31 = vpop.eup %4676 }
 0xf6a   :  { %v4679_v32 = vpop.eup %4678  ;;  %v1875_v34 = vadd.f32 1.0, %v4677_v31 }
 0xf6b   :  { %v1874_v59 = vadd.f32 1.0, %v4679_v32 }
 0xf6c   :  { %v1877_v38 = vmul.f32 %v1875_v34, %v1861_v55 }
 0xf6d   :  { %v1876_v37 = vmul.f32 %v1874_v59, %v1860_v36 }
 0xf6f   :  { %4366 = vmatprep.mubr.msk.f32.mxu0 %vm1890_vm6, %v1876_v37 }
 0xf70   :  { %4367 = vmatmul.mubr.msk.f32.vlgmr.msra.gmra.mrb[18].mxu0 %vm1890_vm6, %v1877_v38 }
 0xf71   :  { %4392 = vmatprep.mubr.msk.f32.mxu0 %vm4774_vm2, %v4773_v60 }
0x1043   :  { %v4368_v0 = vpop.f32.mrb[18].mxu0 }
0x1044   :  { %v1969_v41 = vadd.f32 %v4368_v0, %v1889_v40  ;;  %v1963_v33 = vpop.f32.mrb[19].mxu0 }
0x1045   :  { %v1964_v35 = vadd.f32 %v1963_v33, %v1889_v40 }
0x1046   :  { %v1973_v42 = vadd.f32 %v1969_v41, %v1770_v1 }
0x1047   :  { %v1972_v45 = vadd.f32 %v1964_v35, %v5145_v62  ;;  %v2013_v62 = vld [vmem:[#allocation5 + $0xa0] sm:$0xff] }
0x1048   :  { %v1977_v46 = vsel %vm109_vm1, %v1973_v42, 0.0  ;;  %v4563_v6 = vpack.c.bf16 %v2014_v5, %v2013_v62 }
0x1049   :  { %1978 = vadd.xlane.f32.xlu1 %v1977_v46  ;;  %v1974_v50 = vsel %vm109_vm1, %v1972_v45, 0.0 }
0x104a   :  { %1975 = vadd.xlane.f32.xlu0 %v1974_v50  ;;  %4564 = vmatprep.subr.bf16.mxu1 %v4563_v6 }
0x104b   :  { %4566 = vmatpush3.bf16.msra.mxu1 %v4563_v6 }
0x104c   :  { %4568 = vmatprep.subr.bf16.mxu1 %v4567_v9 }
0x104f   :  { %4570 = vmatpush3.bf16.msra.mxu1 %v4567_v9 }
0x1050   :  { %4380 = vmatprep.subr.mxu1 %v4773_v60 }
0x10d6   :  { %v1979_v51 = vpop.xlane.xlu1 %1978 }
0x10d7   :  { %v1981_v52 = vmul.f32 0.03125, %v1979_v51  ;;  %v1976_v54 = vpop.xlane.xlu0 %1975 }
0x10d8   :  { %v1980_v57 = vmul.f32 0.03125, %v1976_v54 }
0x10d9   :  { %v1983_v2 = vsub.f32 %v1973_v42, %v1981_v52 }
0x10da   :  { %v1982_v58 = vsub.f32 %v1972_v45, %v1980_v57 }
0x10db   :  { %v1985_v63 = vmul.f32 %v1983_v2, %v1983_v2 }
0x10dc   :  { %v1984_v3 = vmul.f32 %v1982_v58, %v1982_v58 }
0x10dd   :  { %v1989_v4 = vsel %vm109_vm1, %v1985_v63, 0.0 }
0x10de   :  { %1990 = vadd.xlane.f32.xlu1 %v1989_v4  ;;  %v1986_v1 = vsel %vm109_vm1, %v1984_v3, 0.0 }
0x10df   :  { %1987 = vadd.xlane.f32.xlu0 %v1986_v1 }
0x116b   :  { %v1991_v10 = vpop.xlane.xlu1 %1990 }
0x116c   :  { %v1993_v11 = vmul.f32 0.03125, %v1991_v10  ;;  %v1988_v12 = vpop.xlane.xlu0 %1987 }
0x116d   :  { %v1992_v13 = vmul.f32 0.03125, %v1988_v12 }
0x116e   :  { %v1995_v14 = vadd.f32 1e-12, %v1993_v11 }
0x116f   :  { %v1994_v17 = vadd.f32 1e-12, %v1992_v13 }
0x1170   :  { %4680 = vrsqrt.f32 %v1995_v14 }
0x1171   :  { %4682 = vrsqrt.f32 %v1994_v17 }
0x117a   :  { %v4681_v21 = vpop.eup %4680 }
0x117b   :  { %v4683_v22 = vpop.eup %4682  ;;  %v1999_v23 = vmul.f32 %v4681_v21, %v1983_v2 }
0x117c   :  { %v1998_v24 = vmul.f32 %v4683_v22, %v1982_v58 }
0x117d   :  { %v2005_v25 = vmul.f32 %v2003_v19, %v1999_v23 }
0x117e   :  { %v2004_v26 = vmul.f32 %v2003_v19, %v1998_v24 }
0x117f   :  { %v5181_v28 = vadd.f32 %v2009_v56, %v2005_v25 }
0x1180   :  { %v5179_v27 = vadd.f32 %v2009_v56, %v2004_v26 }
0x1182   :  { %4377 = vmatprep.mubr.msk.f32.mxu1 %vm109_vm1, %v5179_v27 }
0x1183   :  { %4378 = vmatmul.mubr.msk.f32.vlgmr.msra.gmra.mrb[20].mxu1 %vm109_vm1, %v5181_v28 }
0x1184   :  { %4382 = vmatprep.mubr.msk.f32.mxu1 %vm4774_vm2, %v4773_v60 }
0x1256   :  { %v4379_v30 = vpop.f32.mrb[20].mxu1 }
0x1257   :  { %v5196_v31 = vadd.f32 %v4379_v30, %v2020_v61  ;;  %v2093_v32 = vpop.f32.mrb[21].mxu1 }
0x1258   :  { %v5198_v34 = vadd.f32 %v2093_v32, %v2020_v61 }
0x1259   :  { %2180 = vrot.lane.b32.xlu1 %v5196_v31, %s4775_s18 }
0x125a   :  { %2103 = vrot.lane.b32.xlu0 %v5198_v34, %s4775_s18 }
0x12cb   :  { %v2181_v59 = vpop.permute.xlu1 %2180 }
0x12cc   :  { %v2104_v36 = vpop.permute.xlu0 %2103 }
0x12cd   :  { %4381 = vmatpush3.xpose.msk.msra.mxu1 %vm268_vm3, %v2104_v36 }
0x12ce   :  { %4385 = vmatprep.subr.mxu1 %v4773_v60 }
0x12d0   :  { %4383 = vmatmul.mubr.msk.f32.vlgmr.msra.gmra.mrb[22].mxu1 %vm268_vm3, %v5198_v34 }
0x12d1   :  { %4386 = vmatpush3.xpose.msk.msra.mxu1 %vm268_vm3, %v2181_v59  ;;  %4387 = vmatprep.mubr.msk.f32.mxu1 %vm4774_vm2, %v4773_v60 }
0x12d2   :  { %4395 = vmatprep.subr.mxu1 %v4773_v60 }
0x12d4   :  { %4388 = vmatmul.mubr.msk.f32.vlgmr.msra.gmra.mrb[24].mxu1 %vm268_vm3, %v5196_v31 }
0x12d5   :  { %4397 = vmatprep.mubr.msk.f32.mxu1 %vm4774_vm2, %v4773_v60 }
0x13a3   :  { %v2175_v44 = vpop.f32.mrb[22].mxu1 }
0x13a4   :  { %v2256_v55 = vmul.f32 0.35355338, %v2175_v44  ;;  %v4384_v37 = vpop.f32.mrb[23].mxu1 }
0x13a6   :  { %v2258_v38 = vadd.f32 %v2256_v55, %v4978_v16 }
0x13a7   :  { %v2252_v40 = vpop.f32.mrb[24].mxu1 }
0x13a8   :  { %v2257_v0 = vmul.f32 0.35355338, %v2252_v40  ;;  %v4389_v41 = vpop.f32.mrb[25].mxu1  ;;  %v2260_v33 = vsel %vm268_vm3, %v2258_v38, -inf }
0x13a9   :  { %2261 = vmax.xlane.f32.xlu1 %v2260_v33 }
0x13aa   :  { %v2259_v35 = vadd.f32 %v2257_v0, %v4981_v20 }
0x13ac   :  { %v2263_v42 = vsel %vm268_vm3, %v2259_v35, -inf }
0x13ad   :  { %2264 = vmax.xlane.f32.xlu0 %v2263_v42 }
0x13ba   :  { %2358 = vrot.lane.b32.xlu1 %v5196_v31, %s4777_s1 }
0x13be   :  { %2436 = vrot.lane.b32.xlu1 %v5198_v34, %s4778_s9 }
0x13c2   :  { %2514 = vrot.lane.b32.xlu1 %v5196_v31, %s4778_s9 }
0x13c3   :  { %2282 = vrot.lane.b32.xlu0 %v5198_v34, %s4777_s1 }
0x1436   :  { %v2262_v45 = vpop.xlane.xlu1 %2261 }
0x1437   :  { %v2266_v46 = vsub.f32 %v2258_v38, %v2262_v45 }
0x1439   :  { %v2268_v50 = vmul.f32 1.442695, %v2266_v46 }
0x143a   :  { %v2359_v51 = vpop.permute.xlu1 %2358  ;;  %v2265_v52 = vpop.xlane.xlu0 %2264 }
0x143b   :  { %4684 = vpow2.f32 %v2268_v50  ;;  %v2267_v54 = vsub.f32 %v2259_v35, %v2265_v52  ;;  %4396 = vmatpush3.msra.mxu1 %v2359_v51 }
0x143c   :  { %4405 = vmatprep.subr.mxu1 %v4773_v60 }
0x143d   :  { %v2270_v57 = vmul.f32 1.442695, %v2267_v54 }
0x143e   :  { %v2283_v2 = vpop.permute.xlu0 %2282  ;;  %v2437_v1 = vpop.permute.xlu1 %2436 }
0x143f   :  { %4686 = vpow2.f32 %v2270_v57  ;;  %4391 = vmatpush3.msra.mxu0 %v2283_v2 }
0x1440   :  { %4400 = vmatprep.subr.mxu0 %v4773_v60 }
0x1442   :  { %v2515_v62 = vpop.permute.xlu1 %2514 }
0x1445   :  { %v4685_v58 = vpop.eup %4684 }
0x1446   :  { %v2272_v63 = vsel %vm268_vm3, %v4685_v58, 0.0 }
0x1447   :  { %2273 = vadd.xlane.f32.xlu0 %v2272_v63 }
0x1449   :  { %v4687_v3 = vpop.eup %4686 }
0x144a   :  { %v2275_v4 = vsel %vm268_vm3, %v4687_v3, 0.0 }
0x144b   :  { %2276 = vadd.xlane.f32.xlu1 %v2275_v4 }
0x145c   :  { %2512 = vrot.lane.b32.xlu1 %v5196_v31, %s4779_s10 }
0x145d   :  { %2434 = vrot.lane.b32.xlu0 %v5198_v34, %s4779_s10 }
0x14d4   :  { %v2274_v5 = vpop.xlane.xlu0 %2273 }
0x14d5   :  { %4688 = vrcp.f32 %v2274_v5 }
0x14d8   :  { %v2277_v6 = vpop.xlane.xlu1 %2276  ;;  %v2435_v11 = vpop.permute.xlu0 %2434 }
0x14d9   :  { %4690 = vrcp.f32 %v2277_v6 }
0x14dc   :  { %v2513_v12 = vpop.permute.xlu1 %2512 }
0x14df   :  { %v4689_v7 = vpop.eup %4688 }
0x14e0   :  { %v2280_v8 = vmul.f32 %v4689_v7, %v4685_v58 }
0x14e2   :  { %4393 = vmatmul.mubr.msk.f32.vlgmr.msra.gmra.mrb[20].mxu0 %vm268_vm3, %v2280_v8 }
0x14e3   :  { %v4691_v9 = vpop.eup %4690  ;;  %4401 = vmatpush3.xpose.msk.msra.mxu0 %vm268_vm3, %v2437_v1  ;;  %4402 = vmatprep.mubr.msk.f32.mxu0 %vm4774_vm2, %v4773_v60 }
0x14e4   :  { %v2281_v10 = vmul.f32 %v4691_v9, %v4687_v3  ;;  %4410 = vmatprep.subr.mxu0 %v4773_v60 }
0x14e6   :  { %4398 = vmatmul.mubr.msk.f32.vlgmr.msra.gmra.mrb[26].mxu1 %vm268_vm3, %v2281_v10  ;;  %4403 = vmatmul.mubr.msk.f32.vlgmr.msra.gmra.mrb[22].mxu0 %vm268_vm3, %v2435_v11 }
0x14e7   :  { %4406 = vmatpush3.xpose.msk.msra.mxu1 %vm268_vm3, %v2515_v62  ;;  %4407 = vmatprep.mubr.msk.f32.mxu1 %vm4774_vm2, %v4773_v60 }
0x14e8   :  { %4415 = vmatprep.subr.mxu1 %v4773_v60  ;;  %4412 = vmatprep.mubr.msk.f32.mxu0 %vm4774_vm2, %v4773_v60 }
0x14ea   :  { %4408 = vmatmul.mubr.msk.f32.vlgmr.msra.gmra.mrb[28].mxu1 %vm268_vm3, %v2513_v12 }
0x14eb   :  { %4417 = vmatprep.mubr.msk.f32.mxu1 %vm4774_vm2, %v4773_v60 }
0x15b5   :  { %v5252_v13 = vpop.f32.mrb[20].mxu0 }
0x15b6   :  { %v4394_v14 = vpop.f32.mrb[21].mxu0 }
0x15b9   :  { %v5254_v17 = vpop.f32.mrb[26].mxu1  ;;  %v2508_v19 = vpop.f32.mrb[22].mxu0 }
0x15ba   :  { %v2590_v21 = vmul.f32 0.35355338, %v2508_v19  ;;  %v4399_v22 = vpop.f32.mrb[27].mxu1  ;;  %v4404_v23 = vpop.f32.mrb[23].mxu0 }
0x15bc   :  { %v2592_v24 = vadd.f32 %v2590_v21, %v4978_v16 }
0x15bd   :  { %v2586_v56 = vpop.f32.mrb[28].mxu1 }
0x15be   :  { %v2591_v25 = vmul.f32 0.35355338, %v2586_v56  ;;  %v4409_v26 = vpop.f32.mrb[29].mxu1  ;;  %v2594_v61 = vsel %vm268_vm3, %v2592_v24, -inf }
0x15bf   :  { %2595 = vmax.xlane.f32.xlu0 %v2594_v61 }
0x15c0   :  { %v2593_v30 = vadd.f32 %v2591_v25, %v4981_v20 }
0x15c2   :  { %v2597_v32 = vsel %vm268_vm3, %v2593_v30, -inf }
0x15c3   :  { %2598 = vmax.xlane.f32.xlu1 %v2597_v32 }
0x15d4   :  { %2692 = vrot.lane.b32.xlu1 %v5196_v31, %s4780_s19 }
0x15d5   :  { %2616 = vrot.lane.b32.xlu0 %v5198_v34, %s4780_s19 }
0x15d8   :  { %2770 = vrot.lane.b32.xlu1 %v5198_v34, %s4781_s20 }
0x15dc   :  { %2848 = vrot.lane.b32.xlu1 %v5196_v31, %s4781_s20 }
0x15e0   :  { %2846 = vrot.lane.b32.xlu1 %v5196_v31, %s4782_s11 }
0x164c   :  { %v2596_v36 = vpop.xlane.xlu0 %2595 }
0x164d   :  { %v2600_v59 = vsub.f32 %v2592_v24, %v2596_v36 }
0x164f   :  { %v2602_v44 = vmul.f32 1.442695, %v2600_v59 }
0x1650   :  { %v2617_v55 = vpop.permute.xlu0 %2616  ;;  %v2599_v37 = vpop.xlane.xlu1 %2598 }
0x1651   :  { %4692 = vpow2.f32 %v2602_v44  ;;  %v2601_v38 = vsub.f32 %v2593_v30, %v2599_v37  ;;  %4411 = vmatpush3.msra.mxu0 %v2617_v55 }
0x1652   :  { %4420 = vmatprep.subr.mxu0 %v4773_v60 }
0x1653   :  { %v2604_v40 = vmul.f32 1.442695, %v2601_v38 }
0x1654   :  { %v2693_v0 = vpop.permute.xlu1 %2692 }
0x1655   :  { %4694 = vpow2.f32 %v2604_v40  ;;  %4416 = vmatpush3.msra.mxu1 %v2693_v0 }
0x1656   :  { %4425 = vmatprep.subr.mxu1 %v4773_v60 }
0x1658   :  { %v2771_v50 = vpop.permute.xlu1 %2770 }
0x165b   :  { %v4693_v41 = vpop.eup %4692 }
0x165c   :  { %v2606_v33 = vsel %vm268_vm3, %v4693_v41, 0.0  ;;  %v2849_v57 = vpop.permute.xlu1 %2848 }
0x165d   :  { %2607 = vadd.xlane.f32.xlu0 %v2606_v33 }
0x165f   :  { %v4695_v35 = vpop.eup %4694 }
0x1660   :  { %v2609_v42 = vsel %vm268_vm3, %v4695_v35, 0.0  ;;  %v2847_v63 = vpop.permute.xlu1 %2846 }
0x1661   :  { %2610 = vadd.xlane.f32.xlu0 %v2609_v42 }
0x1677   :  { %2768 = vrot.lane.b32.xlu0 %v5198_v34, %s4782_s11 }
0x16ea   :  { %v2608_v45 = vpop.xlane.xlu0 %2607 }
0x16eb   :  { %4696 = vrcp.f32 %v2608_v45 }
0x16ee   :  { %v2611_v46 = vpop.xlane.xlu0 %2610 }
0x16ef   :  { %4698 = vrcp.f32 %v2611_v46 }
0x16f2   :  { %v2769_v58 = vpop.permute.xlu0 %2768 }
0x16f5   :  { %v4697_v51 = vpop.eup %4696 }
0x16f6   :  { %v2614_v52 = vmul.f32 %v4697_v51, %v4693_v41 }
0x16f8   :  { %4413 = vmatmul.mubr.msk.f32.vlgmr.msra.gmra.mrb[24].mxu0 %vm268_vm3, %v2614_v52 }
0x16f9   :  { %v4699_v54 = vpop.eup %4698  ;;  %4421 = vmatpush3.xpose.msk.msra.mxu0 %vm268_vm3, %v2771_v50  ;;  %4422 = vmatprep.mubr.msk.f32.mxu0 %vm4774_vm2, %v4773_v60 }
0x16fa   :  { %v2615_v2 = vmul.f32 %v4699_v54, %v4695_v35  ;;  %4430 = vmatprep.subr.mxu0 %v4773_v60 }
0x16fc   :  { %4418 = vmatmul.mubr.msk.f32.vlgmr.msra.gmra.mrb[30].mxu1 %vm268_vm3, %v2615_v2  ;;  %4423 = vmatmul.mubr.msk.f32.vlgmr.msra.gmra.mrb[26].mxu0 %vm268_vm3, %v2769_v58 }
0x16fd   :  { %4426 = vmatpush3.xpose.msk.msra.mxu1 %vm268_vm3, %v2849_v57  ;;  %4427 = vmatprep.mubr.msk.f32.mxu1 %vm4774_vm2, %v4773_v60 }
0x16fe   :  { %4435 = vmatprep.subr.mxu1 %v4773_v60  ;;  %4432 = vmatprep.mubr.msk.f32.mxu0 %vm4774_vm2, %v4773_v60 }
0x1700   :  { %4428 = vmatmul.mubr.msk.f32.vlgmr.msra.gmra.mrb[32].mxu1 %vm268_vm3, %v2847_v63 }
0x1701   :  { %4437 = vmatprep.mubr.msk.f32.mxu1 %vm4774_vm2, %v4773_v60 }
0x17cb   :  { %v5292_v3 = vpop.f32.mrb[24].mxu0 }
0x17cc   :  { %v4414_v4 = vpop.f32.mrb[25].mxu0 }
0x17cf   :  { %v5294_v1 = vpop.f32.mrb[30].mxu1  ;;  %v2842_v62 = vpop.f32.mrb[26].mxu0 }
0x17d0   :  { %v2924_v5 = vmul.f32 0.35355338, %v2842_v62  ;;  %v4419_v6 = vpop.f32.mrb[31].mxu1  ;;  %v4424_v7 = vpop.f32.mrb[27].mxu0 }
0x17d2   :  { %v2926_v8 = vadd.f32 %v2924_v5, %v4978_v16 }
0x17d3   :  { %v2920_v9 = vpop.f32.mrb[32].mxu1 }
0x17d4   :  { %v2925_v10 = vmul.f32 0.35355338, %v2920_v9  ;;  %v4429_v11 = vpop.f32.mrb[33].mxu1  ;;  %v2928_v12 = vsel %vm268_vm3, %v2926_v8, -inf }
0x17d5   :  { %2929 = vmax.xlane.f32.xlu0 %v2928_v12 }
0x17d6   :  { %v2927_v14 = vadd.f32 %v2925_v10, %v4981_v20 }
0x17d8   :  { %v2931_v19 = vsel %vm268_vm3, %v2927_v14, -inf }
0x17d9   :  { %2932 = vmax.xlane.f32.xlu1 %v2931_v19 }
0x17ea   :  { %3026 = vrot.lane.b32.xlu1 %v5196_v31, %s4783_s12 }
0x17eb   :  { %2950 = vrot.lane.b32.xlu0 %v5198_v34, %s4783_s12 }
0x17ee   :  { %3104 = vrot.lane.b32.xlu1 %v5198_v34, %s4784_s3 }
0x17f2   :  { %3182 = vrot.lane.b32.xlu1 %v5196_v31, %s4784_s3 }
0x17f6   :  { %3180 = vrot.lane.b32.xlu1 %v5196_v31, %s4785_s21 }
0x1862   :  { %v2930_v21 = vpop.xlane.xlu0 %2929 }
0x1863   :  { %v2934_v22 = vsub.f32 %v2926_v8, %v2930_v21 }
0x1865   :  { %v2936_v23 = vmul.f32 1.442695, %v2934_v22 }
0x1866   :  { %v2951_v24 = vpop.permute.xlu0 %2950  ;;  %v2933_v56 = vpop.xlane.xlu1 %2932 }
0x1867   :  { %4700 = vpow2.f32 %v2936_v23  ;;  %v2935_v25 = vsub.f32 %v2927_v14, %v2933_v56  ;;  %4431 = vmatpush3.msra.mxu0 %v2951_v24 }
0x1868   :  { %4440 = vmatprep.subr.mxu0 %v4773_v60 }
0x1869   :  { %v2938_v26 = vmul.f32 1.442695, %v2935_v25  ;;  %v3466_v25 = vld [vmem:[#allocation5 + $0xc0] sm:$0xff] }
0x186a   :  { %v3027_v61 = vpop.permute.xlu1 %3026 }
0x186b   :  { %4702 = vpow2.f32 %v2938_v26  ;;  %4436 = vmatpush3.msra.mxu1 %v3027_v61  ;;  %v3467_v26 = vld [vmem:[#allocation5 + $0xc8] sm:$0xff] }
0x186c   :  { %4445 = vmatprep.subr.mxu1 %v4773_v60  ;;  %v4571_v61 = vpack.c.bf16 %v3467_v26, %v3466_v25  ;;  %v3592_v26 = vrot.slane %v5192_v29, %v1767_v49  ;;  %v3706_v49 = vld [vmem:[#allocation5 + $0x120] sm:$0xff] }
0x186e   :  { %v3105_v37 = vpop.permute.xlu1 %3104 }
0x1871   :  { %v4701_v30 = vpop.eup %4700 }
0x1872   :  { %v2940_v32 = vsel %vm268_vm3, %v4701_v30, 0.0  ;;  %v3183_v41 = vpop.permute.xlu1 %3182 }
0x1873   :  { %2941 = vadd.xlane.f32.xlu0 %v2940_v32 }
0x1875   :  { %v4703_v36 = vpop.eup %4702 }
0x1876   :  { %v2943_v59 = vsel %vm268_vm3, %v4703_v36, 0.0  ;;  %v3181_v42 = vpop.permute.xlu1 %3180 }
0x1877   :  { %2944 = vadd.xlane.f32.xlu0 %v2943_v59 }
0x188d   :  { %3102 = vrot.lane.b32.xlu0 %v5198_v34, %s4785_s21 }
0x1900   :  { %v2942_v44 = vpop.xlane.xlu0 %2941 }
0x1901   :  { %4704 = vrcp.f32 %v2942_v44 }
0x1904   :  { %v2945_v55 = vpop.xlane.xlu0 %2944 }
0x1905   :  { %4706 = vrcp.f32 %v2945_v55 }
0x1908   :  { %v3103_v35 = vpop.permute.xlu0 %3102 }
0x190b   :  { %v4705_v38 = vpop.eup %4704 }
0x190c   :  { %v2948_v40 = vmul.f32 %v4705_v38, %v4701_v30  ;;  %v3469_v30 = vld [vmem:[#allocation5 + $0xd8] sm:$0xff] }
0x190e   :  { %4433 = vmatmul.mubr.msk.f32.vlgmr.msra.gmra.mrb[28].mxu0 %vm268_vm3, %v2948_v40 }
0x190f   :  { %v4707_v0 = vpop.eup %4706  ;;  %4441 = vmatpush3.xpose.msk.msra.mxu0 %vm268_vm3, %v3105_v37  ;;  %4442 = vmatprep.mubr.msk.f32.mxu0 %vm4774_vm2, %v4773_v60 }
0x1910   :  { %v2949_v33 = vmul.f32 %v4707_v0, %v4703_v36  ;;  %4450 = vmatprep.subr.mxu0 %v4773_v60 }
0x1912   :  { %4438 = vmatmul.mubr.msk.f32.vlgmr.msra.gmra.mrb[34].mxu1 %vm268_vm3, %v2949_v33  ;;  %4443 = vmatmul.mubr.msk.f32.vlgmr.msra.gmra.mrb[30].mxu0 %vm268_vm3, %v3103_v35 }
0x1913   :  { %4446 = vmatpush3.xpose.msk.msra.mxu1 %vm268_vm3, %v3183_v41  ;;  %4447 = vmatprep.mubr.msk.f32.mxu1 %vm4774_vm2, %v4773_v60 }
0x1914   :  { %4455 = vmatprep.subr.mxu1 %v4773_v60  ;;  %4452 = vmatprep.mubr.msk.f32.mxu0 %vm4774_vm2, %v4773_v60 }
0x1916   :  { %4448 = vmatmul.mubr.msk.f32.vlgmr.msra.gmra.mrb[36].mxu1 %vm268_vm3, %v3181_v42 }
0x1917   :  { %4457 = vmatprep.mubr.msk.f32.mxu1 %vm4774_vm2, %v4773_v60 }
0x19e1   :  { %v3022_v45 = vpop.f32.mrb[28].mxu0 }
0x19e2   :  { %v4434_v46 = vpop.f32.mrb[29].mxu0 }
0x19e5   :  { %v3098_v50 = vpop.f32.mrb[34].mxu1  ;;  %v3176_v51 = vpop.f32.mrb[30].mxu0 }
0x19e6   :  { %v3258_v52 = vmul.f32 0.35355338, %v3176_v51  ;;  %v4439_v54 = vpop.f32.mrb[35].mxu1  ;;  %v4444_v57 = vpop.f32.mrb[31].mxu0 }
0x19e8   :  { %v3260_v2 = vadd.f32 %v3258_v52, %v4978_v16 }
0x19e9   :  { %v3254_v58 = vpop.f32.mrb[36].mxu1 }
0x19ea   :  { %v3259_v63 = vmul.f32 0.35355338, %v3254_v58  ;;  %v4449_v4 = vpop.f32.mrb[37].mxu1  ;;  %v3262_v62 = vsel %vm268_vm3, %v3260_v2, -inf }
0x19eb   :  { %3263 = vmax.xlane.f32.xlu0 %v3262_v62 }
0x19ec   :  { %v3261_v5 = vadd.f32 %v3259_v63, %v4981_v20 }
0x19ee   :  { %v3265_v6 = vsel %vm268_vm3, %v3261_v5, -inf }
0x19ef   :  { %3266 = vmax.xlane.f32.xlu1 %v3265_v6 }
0x1a00   :  { %3360 = vrot.lane.b32.xlu1 %v5196_v31, %s4786_s22 }
0x1a04   :  { %3438 = vrot.lane.b32.xlu1 %v5292_v3, %s4772_s8 }
0x1a08   :  { %3440 = vrot.lane.b32.xlu1 %v5294_v1, %s4772_s8 }
0x1a0c   :  { %3448 = vrot.lane.b32.xlu1 %v3098_v50, %s4787_s13 }
0x1a78   :  { %v3264_v16 = vpop.xlane.xlu0 %3263 }
0x1a79   :  { %v3268_v7 = vsub.f32 %v3260_v2, %v3264_v16 }
0x1a7b   :  { %v3270_v8 = vmul.f32 1.442695, %v3268_v7 }
0x1a7c   :  { %v3267_v9 = vpop.xlane.xlu1 %3266 }
0x1a7d   :  { %4708 = vpow2.f32 %v3270_v8  ;;  %v3269_v20 = vsub.f32 %v3261_v5, %v3267_v9 }
0x1a7f   :  { %v3272_v10 = vmul.f32 1.442695, %v3269_v20 }
0x1a80   :  { %v3361_v11 = vpop.permute.xlu1 %3360 }
0x1a81   :  { %4710 = vpow2.f32 %v3272_v10  ;;  %4456 = vmatpush3.msra.mxu1 %v3361_v11  ;;  %v3596_v10 = vld [vmem:[#allocation5 + $0xe8] sm:$0xff] }
0x1a84   :  { %v3439_v37 = vpop.permute.xlu1 %3438 }
0x1a85   :  { %v3460_v0 = vsel %vm268_vm3, %v5252_v13, %v3439_v37  ;;  %v3473_v13 = vrot.slane %v5192_v29, %v4928_v48  ;;  %v3704_v37 = vld [vmem:[#allocation5 + $0x110] sm:$0xff] }
0x1a87   :  { %v4709_v12 = vpop.eup %4708 }
0x1a88   :  { %v3274_v31 = vsel %vm268_vm3, %v4709_v12, 0.0  ;;  %v3441_v38 = vpop.permute.xlu1 %3440 }
0x1a89   :  { %3275 = vadd.xlane.f32.xlu0 %v3274_v31  ;;  %v3598_v31 = vld [vmem:[#allocation5 + $0xf8] sm:$0xff] }
0x1a8b   :  { %v4711_v3 = vpop.eup %4710 }
0x1a8c   :  { %v3277_v14 = vsel %vm268_vm3, %v4711_v3, 0.0  ;;  %v3449_v41 = vpop.permute.xlu1 %3448 }
0x1a8d   :  { %3278 = vadd.xlane.f32.xlu0 %v3277_v14 }
0x1aa3   :  { %3284 = vrot.lane.b32.xlu0 %v5198_v34, %s4786_s22  ;;  %v3468_v34 = vld [vmem:[#allocation5 + $0xd0] sm:$0xff] }
0x1aa4   :  { %v4575_v32 = vpack.c.bf16 %v3469_v30, %v3468_v34 }
0x1aa7   :  { %3446 = vrot.lane.b32.xlu0 %v3022_v45, %s4787_s13  ;;  %v3461_v45 = vsel %vm268_vm3, %v5254_v17, %v3441_v38  ;;  %v3705_v38 = vld [vmem:[#allocation5 + $0x118] sm:$0xff] }
0x1aa8   :  { %v3463_v46 = vsel %vm1636_vm5, %v3461_v45, %v3449_v41  ;;  %v3602_v45 = vrot.slane %v5192_v29, %v5152_v15 }
0x1b16   :  { %v3276_v1 = vpop.xlane.xlu0 %3275 }
0x1b17   :  { %4712 = vrcp.f32 %v3276_v1 }
0x1b1a   :  { %v3279_v19 = vpop.xlane.xlu0 %3278 }
0x1b1b   :  { %4714 = vrcp.f32 %v3279_v19 }
0x1b1e   :  { %v3285_v21 = vpop.permute.xlu0 %3284 }
0x1b1f   :  { %4451 = vmatpush3.msra.mxu0 %v3285_v21 }
0x1b20   :  { %4572 = vmatprep.subr.bf16.mxu0 %v4571_v61 }
0x1b21   :  { %v4713_v22 = vpop.eup %4712 }
0x1b22   :  { %v3282_v23 = vmul.f32 %v4713_v22, %v4709_v12  ;;  %v3447_v40 = vpop.permute.xlu0 %3446  ;;  %v3597_v12 = vld [vmem:[#allocation5 + $0xf0] sm:$0xff] }
0x1b23   :  { %v3462_v33 = vsel %vm1636_vm5, %v3460_v0, %v3447_v40  ;;  %v4591_v40 = vpack.c.bf16 %v3705_v38, %v3704_v37  ;;  %v3707_v0 = vld [vmem:[#allocation5 + $0x128] sm:$0xff] }
0x1b24   :  { %4453 = vmatmul.mubr.msk.f32.vlgmr.msra.gmra.mrb[32].mxu0 %vm268_vm3, %v3282_v23  ;;  %v4595_v41 = vpack.c.bf16 %v3707_v0, %v3706_v49 }
0x1b25   :  { %v4715_v24 = vpop.eup %4714  ;;  %4574 = vmatpush3.bf16.msra.mxu0 %v4571_v61 }
0x1b26   :  { %v3283_v56 = vmul.f32 %v4715_v24, %v4711_v3  ;;  %4576 = vmatprep.subr.bf16.mxu0 %v4575_v32  ;;  %v4583_v3 = vpack.c.bf16 %v3598_v31, %v3597_v12  ;;  %v3586_v24 = vrot.slane %v5192_v29, %v1761_v47  ;;  %v3702_v47 = vld [vmem:[#allocation5 + $0x100] sm:$0xff] }
0x1b28   :  { %4458 = vmatmul.mubr.msk.f32.vlgmr.msra.gmra.mrb[38].mxu1 %vm268_vm3, %v3283_v56 }
0x1b29   :  { %4578 = vmatpush3.bf16.msra.mxu0 %v4575_v32 }
0x1bf7   :  { %v3356_v36 = vpop.f32.mrb[32].mxu0 }
0x1bf8   :  { %3454 = vrot.lane.b32.xlu0 %v3356_v36, %s4788_s14  ;;  %v4454_v59 = vpop.f32.mrb[33].mxu0 }
0x1bfb   :  { %v3432_v44 = vpop.f32.mrb[38].mxu1 }
0x1bfc   :  { %3456 = vrot.lane.b32.xlu1 %v3432_v44, %s4788_s14  ;;  %v4459_v55 = vpop.f32.mrb[39].mxu1  ;;  %v3703_v44 = vld [vmem:[#allocation5 + $0x108] sm:$0xff] }
0x1bfd   :  { %v4587_v55 = vpack.c.bf16 %v3703_v44, %v3702_v47  ;;  %v3837_v47 = vld [vmem:[#allocation5 + $0x150] sm:$0xff]  ;;  %v3838_v44 = vld [vmem:[#allocation5 + $0x158] sm:$0xff] }
0x1bfe   :  { %v4607_v37 = vpack.c.bf16 %v3838_v44, %v3837_v47 }
0x1bff   :  { %4588 = vmatprep.subr.bf16.mxu0 %v4587_v55 }
0x1c6a   :  { %v3455_v35 = vpop.permute.xlu0 %3454 }
0x1c6b   :  { %v3464_v42 = vsel %vm1639_vm4, %v3462_v33, %v3455_v35  ;;  %v3708_v33 = vld [vmem:[#allocation5 + $0x130] sm:$0xff]  ;;  %v3709_v35 = vld [vmem:[#allocation5 + $0x138] sm:$0xff] }
0x1c6c   :  { %4468 = vmatprep.mubr.msk.f32.mxu0 %vm109_vm1, %v3464_v42  ;;  %v4599_v42 = vpack.c.bf16 %v3709_v35, %v3708_v33  ;;  %v3826_v35 = vrot.slane %v5192_v29, %v2002_v53  ;;  %v3921_v53 = vld [vmem:[#allocation5 + $0x160] sm:$0xff] }
0x1c6e   :  { %v3457_v50 = vpop.permute.xlu1 %3456 }
0x1c6f   :  { %v3465_v51 = vsel %vm1639_vm4, %v3463_v46, %v3457_v50 }
0x1c70   :  { %4469 = vmatmul.mubr.msk.f32.vlgmr.msra.gmra.mrb[34].mxu0 %vm109_vm1, %v3465_v51 }
0x1c71   :  { %4590 = vmatpush3.bf16.msra.mxu0 %v4587_v55  ;;  %v4789_v55 = vmov 0.0|0.0  }
0x1c72   :  { %4592 = vmatprep.subr.bf16.mxu0 %v4591_v40 }
0x1c75   :  { %4594 = vmatpush3.bf16.msra.mxu0 %v4591_v40 }
0x1c76   :  { %4596 = vmatprep.subr.bf16.mxu0 %v4595_v41 }
0x1c79   :  { %4598 = vmatpush3.bf16.msra.mxu0 %v4595_v41 }
0x1c7a   :  { %4600 = vmatprep.subr.bf16.mxu0 %v4599_v42 }
0x1c7d   :  { %4602 = vmatpush3.bf16.msra.mxu0 %v4599_v42 }
0x1d43   :  { %v4470_v52 = vpop.f32.mrb[34].mxu0 }
0x1d44   :  { %v3552_v54 = vadd.f32 %v4470_v52, %v3473_v13  ;;  %v3546_v57 = vpop.f32.mrb[35].mxu0 }
0x1d45   :  { %v3547_v2 = vadd.f32 %v3546_v57, %v3473_v13 }
0x1d46   :  { %v3556_v58 = vadd.f32 %v3552_v54, %v5181_v28 }
0x1d47   :  { %v3555_v63 = vadd.f32 %v3547_v2, %v5179_v27  ;;  %v3595_v27 = vld [vmem:[#allocation5 + $0xe0] sm:$0xff] }
0x1d48   :  { %v3560_v17 = vsel %vm109_vm1, %v3556_v58, 0.0  ;;  %v4579_v11 = vpack.c.bf16 %v3596_v10, %v3595_v27  ;;  %v3713_v27 = vrot.slane %v5192_v29, %v5161_v39 }
0x1d49   :  { %3561 = vadd.xlane.f32.xlu1 %v3560_v17  ;;  %v3557_v4 = vsel %vm109_vm1, %v3555_v63, 0.0 }
0x1d4a   :  { %3558 = vadd.xlane.f32.xlu0 %v3557_v4  ;;  %4580 = vmatprep.subr.bf16.mxu1 %v4579_v11 }
0x1d4b   :  { %4582 = vmatpush3.bf16.msra.mxu1 %v4579_v11 }
0x1d4c   :  { %4584 = vmatprep.subr.bf16.mxu1 %v4583_v3 }
0x1d4f   :  { %4586 = vmatpush3.bf16.msra.mxu1 %v4583_v3 }
0x1d50   :  { %4603 = vmatprep.subr.bf16.mxu1 %v4789_v55 }
0x1dd6   :  { %v3562_v62 = vpop.xlane.xlu1 %3561 }
0x1dd7   :  { %v3564_v5 = vmul.f32 0.03125, %v3562_v62  ;;  %v3559_v6 = vpop.xlane.xlu0 %3558 }
0x1dd8   :  { %v3563_v16 = vmul.f32 0.03125, %v3559_v6 }
0x1dd9   :  { %v3566_v7 = vsub.f32 %v3556_v58, %v3564_v5 }
0x1dda   :  { %v3565_v48 = vsub.f32 %v3555_v63, %v3563_v16 }
0x1ddb   :  { %v3568_v20 = vmul.f32 %v3566_v7, %v3566_v7 }
0x1ddc   :  { %v3567_v8 = vmul.f32 %v3565_v48, %v3565_v48 }
0x1ddd   :  { %v3572_v28 = vsel %vm109_vm1, %v3568_v20, 0.0 }
0x1dde   :  { %v3569_v9 = vsel %vm109_vm1, %v3567_v8, 0.0 }
0x1ddf   :  { %3570 = vadd.xlane.f32.xlu0 %v3569_v9 }
0x1de3   :  { %3573 = vadd.xlane.f32.xlu0 %v3572_v28 }
0x1e6c   :  { %v3571_v14 = vpop.xlane.xlu0 %3570 }
0x1e6d   :  { %v3575_v1 = vmul.f32 0.03125, %v3571_v14 }
0x1e6f   :  { %v3577_v19 = vadd.f32 1e-12, %v3575_v1 }
0x1e70   :  { %v3574_v21 = vpop.xlane.xlu0 %3573 }
0x1e71   :  { %4716 = vrsqrt.f32 %v3577_v19  ;;  %v3576_v22 = vmul.f32 0.03125, %v3574_v21 }
0x1e73   :  { %v3578_v23 = vadd.f32 1e-12, %v3576_v22 }
0x1e75   :  { %4718 = vrsqrt.f32 %v3578_v23 }
0x1e7b   :  { %v4717_v56 = vpop.eup %4716 }
0x1e7c   :  { %v3581_v25 = vmul.f32 %v4717_v56, %v3565_v48 }
0x1e7e   :  { %v3587_v61 = vmul.f32 %v3586_v24, %v3581_v25 }
0x1e7f   :  { %v4719_v34 = vpop.eup %4718 }
0x1e80   :  { %v3582_v30 = vmul.f32 %v4719_v34, %v3566_v7  ;;  %v3593_v32 = vadd.f32 %v3592_v26, %v3587_v61 }
0x1e82   :  { %v3588_v36 = vmul.f32 %v3586_v24, %v3582_v30  ;;  %4479 = vmatprep.mubr.msk.f32.mxu1 %vm109_vm1, %v3593_v32 }
0x1e84   :  { %v3594_v59 = vadd.f32 %v3592_v26, %v3588_v36  ;;  %v3836_v36 = vld [vmem:[#allocation5 + $0x148] sm:$0xff] }
0x1e86   :  { %4480 = vmatmul.mubr.msk.f32.vlgmr.msra.gmra.mrb[40].mxu1 %vm109_vm1, %v3594_v59 }
0x1e87   :  { %4509 = vmatprep.mubr.msk.f32.mxu1 %vm4774_vm2, %v4773_v60 }
0x1f59   :  { %v4481_v46 = vpop.f32.mrb[40].mxu1 }
0x1f5a   :  { %v3681_v50 = vadd.f32 %v4481_v46, %v3602_v45  ;;  %v3675_v51 = vpop.f32.mrb[41].mxu1 }
0x1f5b   :  { %v3676_v13 = vadd.f32 %v3675_v51, %v3602_v45 }
0x1f5c   :  { %v3687_v52 = vmul.f32 0.044715, %v3681_v50  ;;  %v3685_v9 = vmul.f32 0.5, %v3681_v50 }
0x1f5d   :  { %v3686_v54 = vmul.f32 0.044715, %v3676_v13  ;;  %v3684_v48 = vmul.f32 0.5, %v3676_v13 }
0x1f5e   :  { %v3689_v57 = vmul.f32 %v3687_v52, %v3681_v50 }
0x1f5f   :  { %v3688_v2 = vmul.f32 %v3686_v54, %v3676_v13 }
0x1f60   :  { %v3691_v58 = vmul.f32 %v3689_v57, %v3681_v50 }
0x1f61   :  { %v3690_v63 = vmul.f32 %v3688_v2, %v3676_v13 }
0x1f62   :  { %v3693_v17 = vadd.f32 %v3691_v58, %v3681_v50  ;;  %v3832_v50 = vrot.slane %v5192_v29, %v2008_v18  ;;  %v4730_v29 = vld [vmem:[%s5412_s4 + $0x10] sm:$0xff] }
0x1f63   :  { %v3692_v4 = vadd.f32 %v3690_v63, %v3676_v13  ;;  %v3922_v63 = vld [vmem:[#allocation5 + $0x168] sm:$0xff] }
0x1f64   :  { %v3695_v62 = vmul.f32 0.7978846, %v3693_v17  ;;  %v3923_v17 = vld [vmem:[#allocation5 + $0x170] sm:$0xff] }
0x1f65   :  { %v3694_v5 = vmul.f32 0.7978846, %v3692_v4  ;;  %v4610_v4 = vpack.c.bf16 %v3922_v63, %v3921_v53  ;;  %v4613_v18 = vpack.c.bf16 %v3924_v43, %v3923_v17 }
0x1f66   :  { %4720 = vtanh.f32 %v3695_v62  ;;  %v3842_v62 = vrot.slane %v4730_v29, %v5152_v15 }
0x1f67   :  { %4722 = vtanh.f32 %v3694_v5 }
0x1f70   :  { %v4721_v6 = vpop.eup %4720 }
0x1f71   :  { %v4723_v16 = vpop.eup %4722  ;;  %v3699_v7 = vadd.f32 1.0, %v4721_v6 }
0x1f72   :  { %v3698_v8 = vadd.f32 1.0, %v4723_v16 }
0x1f73   :  { %v3701_v28 = vmul.f32 %v3699_v7, %v3685_v9  ;;  %v3928_v7 = vrot.slane %v4730_v29, %v5161_v39 }
0x1f74   :  { %v3700_v20 = vmul.f32 %v3698_v8, %v3684_v48 }
0x1f76   :  { %4498 = vmatprep.mubr.msk.f32.mxu0 %vm1890_vm6, %v3700_v20 }
0x1f77   :  { %4499 = vmatmul.mubr.msk.f32.vlgmr.msra.gmra.mrb[36].mxu0 %vm1890_vm6, %v3701_v28 }
0x204a   :  { %v4500_v10 = vpop.f32.mrb[36].mxu0 }
0x204b   :  { %v3792_v11 = vadd.f32 %v4500_v10, %v3713_v27  ;;  %v3786_v12 = vpop.f32.mrb[37].mxu0 }
0x204c   :  { %v3787_v31 = vadd.f32 %v3786_v12, %v3713_v27 }
0x204d   :  { %v3796_v3 = vadd.f32 %v3792_v11, %v3594_v59 }
0x204e   :  { %v3795_v14 = vadd.f32 %v3787_v31, %v3593_v32  ;;  %v3835_v32 = vld [vmem:[#allocation5 + $0x140] sm:$0xff] }
0x204f   :  { %v3800_v1 = vsel %vm109_vm1, %v3796_v3, 0.0  ;;  %v4604_v59 = vpack.c.bf16 %v3836_v36, %v3835_v32 }
0x2050   :  { %3801 = vadd.xlane.f32.xlu0 %v3800_v1  ;;  %v3797_v19 = vsel %vm109_vm1, %v3795_v14, 0.0 }
0x2051   :  { %3798 = vadd.xlane.f32.xlu1 %v3797_v19  ;;  %4605 = vmatpush3.bf16.msra.mxu1 %v4604_v59 }
0x2052   :  { %4606 = vmatprep.subr.bf16.mxu1 %v4789_v55 }
0x2055   :  { %4608 = vmatpush3.bf16.msra.mxu1 %v4607_v37 }
0x2056   :  { %4609 = vmatprep.subr.bf16.mxu1 %v4789_v55 }
0x20dd   :  { %v3802_v21 = vpop.xlane.xlu0 %3801 }
0x20de   :  { %v3804_v22 = vmul.f32 0.03125, %v3802_v21  ;;  %v3799_v23 = vpop.xlane.xlu1 %3798 }
0x20df   :  { %v3803_v24 = vmul.f32 0.03125, %v3799_v23 }
0x20e0   :  { %v3806_v56 = vsub.f32 %v3796_v3, %v3804_v22 }
0x20e1   :  { %v3805_v25 = vsub.f32 %v3795_v14, %v3803_v24 }
0x20e2   :  { %v3808_v26 = vmul.f32 %v3806_v56, %v3806_v56 }
0x20e3   :  { %v3807_v61 = vmul.f32 %v3805_v25, %v3805_v25 }
0x20e4   :  { %v3812_v34 = vsel %vm109_vm1, %v3808_v26, 0.0 }
0x20e5   :  { %3813 = vadd.xlane.f32.xlu0 %v3812_v34  ;;  %v3809_v30 = vsel %vm109_vm1, %v3807_v61, 0.0 }
0x20e6   :  { %3810 = vadd.xlane.f32.xlu1 %v3809_v30 }
0x2172   :  { %v3814_v38 = vpop.xlane.xlu0 %3813 }
0x2173   :  { %v3816_v40 = vmul.f32 0.03125, %v3814_v38  ;;  %v3811_v49 = vpop.xlane.xlu1 %3810 }
0x2174   :  { %v3815_v0 = vmul.f32 0.03125, %v3811_v49 }
0x2175   :  { %v3818_v41 = vadd.f32 1e-12, %v3816_v40 }
0x2176   :  { %v3817_v33 = vadd.f32 1e-12, %v3815_v0 }
0x2177   :  { %4724 = vrsqrt.f32 %v3818_v41 }
0x2178   :  { %4726 = vrsqrt.f32 %v3817_v33 }
0x2181   :  { %v4725_v42 = vpop.eup %4724 }
0x2182   :  { %v4727_v45 = vpop.eup %4726  ;;  %v3822_v46 = vmul.f32 %v4725_v42, %v3806_v56 }
0x2183   :  { %v3821_v51 = vmul.f32 %v4727_v45, %v3805_v25 }
0x2184   :  { %v3828_v13 = vmul.f32 %v3826_v35, %v3822_v46 }
0x2185   :  { %v3827_v52 = vmul.f32 %v3826_v35, %v3821_v51 }
0x2186   :  { %v3834_v54 = vadd.f32 %v3832_v50, %v3828_v13 }
0x2187   :  { %v3833_v57 = vadd.f32 %v3832_v50, %v3827_v52 }
0x2188   :  { %v3845_v2 = vrot.slane %v3834_v54, 7 }
0x218a   :  { %v3847_v58 = vsel %vm3846_vm7, %v3845_v2, %v3833_v57 }
0x218b   :  { %4510 = vmatmul.mubr.msk.f32.vlgmr.msra.gmra.mrb[42].mxu1 %vm109_vm1, %v3847_v58 }
0x218c   :  { %4520 = vmatprep.mubr.msk.f32.mxu1 %vm4774_vm2, %v4773_v60  ;;  %4611 = vmatpush3.bf16.msra.mxu1 %v4610_v4 }
0x218d   :  { %4612 = vmatprep.subr.bf16.mxu1 %v4789_v55 }
0x2190   :  { %4614 = vmatpush3.bf16.msra.mxu1 %v4613_v18 }
0x225e   :  { %v3916_v5 = vpop.f32.mrb[42].mxu1 }
0x225f   :  { %v3917_v6 = vadd.f32 %v3916_v5, %v3842_v62  ;;  %v4511_v16 = vpop.f32.mrb[43].mxu1 }
0x2261   :  { %4728 = vtanh.f32 %v3917_v6 }
0x226b   :  { %v4729_v60 = vpop.eup %4728 }
0x226c   :  { %4521 = vmatmul.mubr.msk.f32.vlgmr.msra.gmra.mrb[44].mxu1 %vm109_vm1, %v4729_v60 }
0x233f   :  { %v3998_v48 = vpop.f32.mrb[44].mxu1 }
0x2340   :  { %v3999_v8 = vadd.f32 %v3998_v48, %v3928_v7  ;;  %v4522_v9 = vpop.f32.mrb[45].mxu1 }
0x2342   :  { %v4003_v20 = vsel %vm4002_vm8, %v3999_v8, 0.0 }
0x2343   :  { %4004 = vst [vmem:[%s5413_s5] sm:$0xff] %v4003_v20 }
0x2344   :  { %4009 = vsyncpa [#allocation6], 1 }

</bundles_post_ra>
